<compile_context>
chip_gen: v7x
topology: tpu7x:2x2x1
jax: 0.10.0
libtpu: 0.0.40
codegen_flags: <defaults>
</compile_context>

<pallas_src>
import jax
import jax.numpy as jnp
from jax.experimental import pallas as pl
from jax.experimental.pallas import tpu as pltpu

MIN_VALUE = -100000000.0


def topdown_kernel(
    # batch-tiled data
    xt_ref, fc_ref, conv_ref, pconv_ref, pool_ref, ppool_ref,
    attm_ref, pntm_ref, h0_ref, c0_ref, h1_ref, c1_ref,
    # resident weights (constant index_map)
    a_wih_fc_ref, a_wih_xt_ref, a_whh_ref, a_b_ref,
    l_wih_att_ref, l_wih_h_ref, l_whh_ref, l_b_ref,
    h2att_w_ref, h2att_b_ref,          # fused attention projections: (R, 2H), (1, 2H)
    al1_w_ref, al2_w_ref,              # alpha nets: (1, H) f32 each
    alpha_b_ref,                       # SMEM (1, 2) f32: [alpha1_b, alpha2_b]
    # outputs
    hatt_ref, catt_ref, hlang_ref, clang_ref, att2w_ref, atth_ref,
):
    f32 = jnp.float32
    bf16 = jnp.bfloat16
    R = h0_ref.shape[-1]
    H = al1_w_ref.shape[-1]

    def mm(x, w_ref):
        # bf16 operands on the MXU, f32 accumulation
        return jnp.dot(x.astype(bf16), w_ref[...], preferred_element_type=f32)

    def lstm_tail(g, c):
        # PyTorch LSTMCell gate order: i, f, g, o
        i = jax.nn.sigmoid(g[:, 0 * R:1 * R])
        f = jax.nn.sigmoid(g[:, 1 * R:2 * R])
        gg = jnp.tanh(g[:, 2 * R:3 * R])
        o = jax.nn.sigmoid(g[:, 3 * R:4 * R])
        c_new = f * c + i * gg
        h_new = o * jnp.tanh(c_new)
        return h_new, c_new

    def softmax_rows(s):
        m = jnp.max(s, axis=-1, keepdims=True)
        e = jnp.exp(s - m)
        return e / jnp.sum(e, axis=-1, keepdims=True)

    xt = xt_ref[...]
    fc = fc_ref[...]
    h0 = h0_ref[...]
    c0 = c0_ref[...]
    h1 = h1_ref[...]
    c1 = c1_ref[...]

    # ---- att_lstm: torch input = cat([fc_feats, xt], 1); concat eliminated by
    #      splitting wih into the fc-rows and xt-rows (host-side). ----
    g_att = (mm(fc, a_wih_fc_ref) + mm(xt, a_wih_xt_ref)
             + mm(h0, a_whh_ref) + a_b_ref[...])
    h_att, c_att = lstm_tail(g_att, c0)

    # ---- fused attention projection: one (TB,R)x(R,2H) matmul, then slice ----
    att_h12 = mm(h_att, h2att_w_ref) + h2att_b_ref[...]
    att_h1 = att_h12[:, :H]
    att_h2 = att_h12[:, H:]

    # ---- Attention (conv feats, unmasked) ----
    dot1 = jnp.tanh(pconv_ref[...].astype(f32) + att_h1[:, None, :])   # (TB, A_conv, H)
    score1 = jnp.sum(dot1 * al1_w_ref[...], axis=-1) + alpha_b_ref[0, 0]
    w1 = softmax_rows(score1)                                          # (TB, A_conv)
    # TODO(synk): for large A_conv/A_pool, switch this weighted sum to a batched MXU
    # dot (einsum 'bqa,bar->bqr'); the mul + sublane reduce is fine at small A.
    att = jnp.sum(w1[:, :, None] * conv_ref[...].astype(f32), axis=1)  # (TB, R)

    # ---- Attention2 (pool feats, 'add' mode, masked) ----
    dot2 = jnp.tanh(ppool_ref[...].astype(f32) + att_h2[:, None, :])   # (TB, A_pool, H)
    score2 = jnp.sum(dot2 * al2_w_ref[...], axis=-1) + alpha_b_ref[0, 1]
    hAflat = jnp.where(attm_ref[...] > 0.5, MIN_VALUE, score2)         # masked_fill_(att_mask)
    frm_masked = jnp.where(pntm_ref[...] > 0.5, MIN_VALUE, hAflat)     # clone + masked_fill_(pnt_mask)
    w2 = softmax_rows(hAflat)                                          # softmax over att_mask-filled
    att2 = jnp.sum(w2[:, :, None] * pool_ref[...].astype(f32), axis=1) # (TB, R)

    # ---- lang_lstm: torch input = cat([att + att2, h_att], 1); concat eliminated ----
    g_lang = (mm(att + att2, l_wih_att_ref) + mm(h_att, l_wih_h_ref)
              + mm(h1, l_whh_ref) + l_b_ref[...])
    h_lang, c_lang = lstm_tail(g_lang, c1)

    # F.dropout(training=False) is the identity; h_lang is stored once and returned
    # twice (output + new state) by the Python wrapper.
    hatt_ref[...] = h_att
    catt_ref[...] = c_att
    hlang_ref[...] = h_lang
    clang_ref[...] = c_lang
    att2w_ref[...] = frm_masked
    atth_ref[...] = att_h2


def topdown_core(xt, fc_feats, conv_feats, p_conv_feats, pool_feats, p_pool_feats,
                 att_mask, pnt_mask, state, params, *, batch_tile=128):
    f32 = jnp.float32
    bf16 = jnp.bfloat16

    B, R = fc_feats.shape
    E = xt.shape[1]
    A_conv = conv_feats.shape[1]
    A_pool = pool_feats.shape[1]
    H = params["attn1_h2att_w"].shape[1]

    # batch tile (must divide B; block second-to-last dim is either full or /8)
    TB = min(batch_tile, B)
    while B % TB != 0:
        TB -= 1
    nb = B // TB

    h0, h1 = state[0][0], state[0][1]
    c0, c1 = state[1][0], state[1][1]

    # forward slices att_mask[:, 1:] / pnt_mask[:, 1:]
    attm = att_mask[:, 1:].astype(f32)
    pntm = pnt_mask[:, 1:].astype(f32)

    # ---- host-side weight repacking (row order == torch concat order) ----
    a_wih = params["att_lstm_wih"]                  # (R + E, 4R), rows = [fc | xt]
    a_wih_fc = a_wih[:R].astype(bf16)
    a_wih_xt = a_wih[R:].astype(bf16)
    a_whh = params["att_lstm_whh"].astype(bf16)
    a_b = params["att_lstm_b"].astype(f32)

    l_wih = params["lang_lstm_wih"]                 # (2R, 4R), rows = [att+att2 | h_att]
    l_wih_att = l_wih[:R].astype(bf16)
    l_wih_h = l_wih[R:].astype(bf16)
    l_whh = params["lang_lstm_whh"].astype(bf16)
    l_b = params["lang_lstm_b"].astype(f32)

    h2att_w = jnp.concatenate(
        [params["attn1_h2att_w"], params["attn2_h2att_w"]], axis=1).astype(bf16)   # (R, 2H)
    h2att_b = jnp.concatenate(
        [params["attn1_h2att_b"], params["attn2_h2att_b"]], axis=1).astype(f32)    # (1, 2H)

    al1_w = params["attn1_alpha_w"].astype(f32)     # (1, H)
    al2_w = params["attn2_alpha_w"].astype(f32)     # (1, H)
    alpha_b = jnp.concatenate(
        [params["attn1_alpha_b"], params["attn2_alpha_b"]], axis=1).astype(f32)    # (1, 2)

    # big feature streams in bf16 (halves HBM->VMEM DMA bytes)
    conv_b = conv_feats.astype(bf16)
    pconv_b = p_conv_feats.astype(bf16)
    pool_b = pool_feats.astype(bf16)
    ppool_b = p_pool_feats.astype(bf16)

    # ---- BlockSpecs ----
    def tiled2(d):
        return pl.BlockSpec((TB, d), lambda b: (b, 0))

    def tiled3(a, d):
        return pl.BlockSpec((TB, a, d), lambda b: (b, 0, 0))

    def resident(arr):
        zeros = (0,) * arr.ndim
        return pl.BlockSpec(arr.shape, lambda b: zeros)

    in_specs = [
        tiled2(E),            # xt
        tiled2(R),            # fc_feats
        tiled3(A_conv, R),    # conv_feats
        tiled3(A_conv, H),    # p_conv_feats
        tiled3(A_pool, R),    # pool_feats
        tiled3(A_pool, H),    # p_pool_feats
        tiled2(A_pool),       # att_mask[:, 1:]
        tiled2(A_pool),       # pnt_mask[:, 1:]
        tiled2(R), tiled2(R), tiled2(R), tiled2(R),     # h0, c0, h1, c1
        resident(a_wih_fc), resident(a_wih_xt), resident(a_whh), resident(a_b),
        resident(l_wih_att), resident(l_wih_h), resident(l_whh), resident(l_b),
        resident(h2att_w), resident(h2att_b),
        resident(al1_w), resident(al2_w),
        pl.BlockSpec(memory_space=pltpu.MemorySpace.SMEM),   # alpha biases (1, 2)
    ]

    inputs = [
        xt, fc_feats, conv_b, pconv_b, pool_b, ppool_b,
        attm, pntm, h0, c0, h1, c1,
        a_wih_fc, a_wih_xt, a_whh, a_b,
        l_wih_att, l_wih_h, l_whh, l_b,
        h2att_w, h2att_b,
        al1_w, al2_w, alpha_b,
    ]

    out_shape = (
        jax.ShapeDtypeStruct((B, R), f32),       # h_att
        jax.ShapeDtypeStruct((B, R), f32),       # c_att
        jax.ShapeDtypeStruct((B, R), f32),       # h_lang
        jax.ShapeDtypeStruct((B, R), f32),       # c_lang
        jax.ShapeDtypeStruct((B, A_pool), f32),  # att2_weight (frm_masked_hAflat)
        jax.ShapeDtypeStruct((B, H), f32),       # att_h
    )
    out_specs = (tiled2(R), tiled2(R), tiled2(R), tiled2(R),
                 tiled2(A_pool), tiled2(H))

    outs = pl.pallas_call(
        topdown_kernel,
        out_shape=out_shape,
        grid=(nb,),
        in_specs=in_specs,
        out_specs=out_specs,
        compiler_params=pltpu.CompilerParams(
            dimension_semantics=("parallel",),
            vmem_limit_bytes=48 * 1024 * 1024,
        ),
    )(*inputs)

    h_att, c_att, h_lang, c_lang, att2_weight, att_h = outs

    output = h_lang  # F.dropout identity (eval mode)
    new_state = (jnp.stack([h_att, h_lang]), jnp.stack([c_att, c_lang]))
    max_grd_val = jnp.zeros((pool_feats.shape[0], 1), dtype=output.dtype)
    grd_val = jnp.zeros((pool_feats.shape[0], 1), dtype=output.dtype)
    return output, new_state, att2_weight, att_h, max_grd_val, grd_val


def init_params(key, enc, R, H):
    ks = jax.random.split(key, 8)

    def linear(k, fan_in, fan_out):
        bound = 1.0 / (fan_in ** 0.5)
        kw, kb = jax.random.split(k)
        w = jax.random.uniform(kw, (fan_in, fan_out), jnp.float32, -bound, bound)
        b = jax.random.uniform(kb, (1, fan_out), jnp.float32, -bound, bound)
        return w, b

    # att_lstm : LSTMCell(enc + R, R); forward cat order is [fc(R), xt(enc)]
    a_wih, a_bih = linear(ks[0], R + enc, 4 * R)
    a_whh, a_bhh = linear(ks[1], R, 4 * R)
    # lang_lstm : LSTMCell(2R, R); forward cat order is [att+att2(R), h_att(R)]
    l_wih, l_bih = linear(ks[2], 2 * R, 4 * R)
    l_whh, l_bhh = linear(ks[3], R, 4 * R)
    # Attention
    h2a1_w, h2a1_b = linear(ks[4], R, H)
    al1_w, al1_b = linear(ks[5], H, 1)
    # Attention2 ('add' mode -> alpha_net: Linear(H, 1))
    h2a2_w, h2a2_b = linear(ks[6], R, H)
    al2_w, al2_b = linear(ks[7], H, 1)

    return {
        "att_lstm_wih": a_wih, "att_lstm_whh": a_whh, "att_lstm_b": a_bih + a_bhh,
        "lang_lstm_wih": l_wih, "lang_lstm_whh": l_whh, "lang_lstm_b": l_bih + l_bhh,
        "attn1_h2att_w": h2a1_w, "attn1_h2att_b": h2a1_b,
        "attn1_alpha_w": al1_w.T, "attn1_alpha_b": al1_b,   # (1, H), (1, 1)
        "attn2_h2att_w": h2a2_w, "attn2_h2att_b": h2a2_b,
        "attn2_alpha_w": al2_w.T, "attn2_alpha_b": al2_b,   # (1, H), (1, 1)
    }


if __name__ == "__main__":
    B = 2
    enc = 32          # input_encoding_size
    R = 32            # rnn_size
    H = 32            # att_hid_size
    A_conv = 16       # number of conv-feature attention regions
    A_pool = 8        # number of pooled region proposals

    key = jax.random.PRNGKey(0)
    k = jax.random.split(key, 12)

    xt = jax.random.normal(k[0], (B, enc), jnp.float32)
    fc_feats = jax.random.normal(k[1], (B, R), jnp.float32)
    conv_feats = jax.random.normal(k[2], (B, A_conv, R), jnp.float32)
    p_conv_feats = jax.random.normal(k[3], (B, A_conv, H), jnp.float32)
    pool_feats = jax.random.normal(k[4], (B, A_pool, R), jnp.float32)
    p_pool_feats = jax.random.normal(k[5], (B, A_pool, H), jnp.float32)

    # boolean masks of shape (B, A_pool + 1); True == masked (filled with min_value)
    att_mask = jnp.broadcast_to(jnp.arange(A_pool + 1)[None, :] >= 7, (B, A_pool + 1))
    pnt_mask = jnp.broadcast_to(jnp.arange(A_pool + 1)[None, :] >= 5, (B, A_pool + 1))

    state = (jax.random.normal(k[6], (2, B, R), jnp.float32),
             jax.random.normal(k[7], (2, B, R), jnp.float32))

    params = init_params(k[8], enc, R, H)

    sim_mat_static_update = None  # unused by the forward pass

    (output, new_state, att2_weight, att_h,
     max_grd_val, grd_val) = topdown_core(
        xt, fc_feats, conv_feats, p_conv_feats, pool_feats, p_pool_feats,
        att_mask, pnt_mask, state, params)

    jax.block_until_ready((output, new_state, att2_weight, att_h, max_grd_val, grd_val))
    print("KERNEL_OK")
</pallas_src>

<mosaic_0001>
module attributes {stable_mosaic.version = 11 : i64} {
  func.func @topdown_kernel(%arg0: i32, %arg1: memref<2x32xf32, #tpu.memory_space<vmem>>, %arg2: memref<2x32xf32, #tpu.memory_space<vmem>>, %arg3: memref<2x16x32xbf16, #tpu.memory_space<vmem>>, %arg4: memref<2x16x32xbf16, #tpu.memory_space<vmem>>, %arg5: memref<2x8x32xbf16, #tpu.memory_space<vmem>>, %arg6: memref<2x8x32xbf16, #tpu.memory_space<vmem>>, %arg7: memref<2x8xf32, #tpu.memory_space<vmem>>, %arg8: memref<2x8xf32, #tpu.memory_space<vmem>>, %arg9: memref<2x32xf32, #tpu.memory_space<vmem>>, %arg10: memref<2x32xf32, #tpu.memory_space<vmem>>, %arg11: memref<2x32xf32, #tpu.memory_space<vmem>>, %arg12: memref<2x32xf32, #tpu.memory_space<vmem>>, %arg13: memref<32x128xbf16, #tpu.memory_space<vmem>>, %arg14: memref<32x128xbf16, #tpu.memory_space<vmem>>, %arg15: memref<32x128xbf16, #tpu.memory_space<vmem>>, %arg16: memref<1x128xf32, #tpu.memory_space<vmem>>, %arg17: memref<32x128xbf16, #tpu.memory_space<vmem>>, %arg18: memref<32x128xbf16, #tpu.memory_space<vmem>>, %arg19: memref<32x128xbf16, #tpu.memory_space<vmem>>, %arg20: memref<1x128xf32, #tpu.memory_space<vmem>>, %arg21: memref<32x64xbf16, #tpu.memory_space<vmem>>, %arg22: memref<1x64xf32, #tpu.memory_space<vmem>>, %arg23: memref<1x32xf32, #tpu.memory_space<vmem>>, %arg24: memref<1x32xf32, #tpu.memory_space<vmem>>, %arg25: memref<1x2xf32, #tpu.memory_space<smem>>, %arg26: memref<2x32xf32, #tpu.memory_space<vmem>>, %arg27: memref<2x32xf32, #tpu.memory_space<vmem>>, %arg28: memref<2x32xf32, #tpu.memory_space<vmem>>, %arg29: memref<2x32xf32, #tpu.memory_space<vmem>>, %arg30: memref<2x8xf32, #tpu.memory_space<vmem>>, %arg31: memref<2x32xf32, #tpu.memory_space<vmem>>) attributes {dimension_semantics = [#tpu.dimension_semantics<parallel>], iteration_bounds = array<i64: 1>, scalar_prefetch = 0 : i64, scratch_operands = 0 : i64, tpu.core_type = #tpu.core_type<tc>, window_params = [{transform_indices = @transform_0, window_bounds = array<i64: 2, 32>}, {transform_indices = @transform_1, window_bounds = array<i64: 2, 32>}, {transform_indices = @transform_2, window_bounds = array<i64: 2, 16, 32>}, {transform_indices = @transform_3, window_bounds = array<i64: 2, 16, 32>}, {transform_indices = @transform_4, window_bounds = array<i64: 2, 8, 32>}, {transform_indices = @transform_5, window_bounds = array<i64: 2, 8, 32>}, {transform_indices = @transform_6, window_bounds = array<i64: 2, 8>}, {transform_indices = @transform_7, window_bounds = array<i64: 2, 8>}, {transform_indices = @transform_8, window_bounds = array<i64: 2, 32>}, {transform_indices = @transform_9, window_bounds = array<i64: 2, 32>}, {transform_indices = @transform_10, window_bounds = array<i64: 2, 32>}, {transform_indices = @transform_11, window_bounds = array<i64: 2, 32>}, {pipeline_mode = #tpu.pipeline_mode<synchronous>, transform_indices = @transform_12, window_bounds = array<i64: 32, 128>}, {pipeline_mode = #tpu.pipeline_mode<synchronous>, transform_indices = @transform_13, window_bounds = array<i64: 32, 128>}, {pipeline_mode = #tpu.pipeline_mode<synchronous>, transform_indices = @transform_14, window_bounds = array<i64: 32, 128>}, {pipeline_mode = #tpu.pipeline_mode<synchronous>, transform_indices = @transform_15, window_bounds = array<i64: 1, 128>}, {pipeline_mode = #tpu.pipeline_mode<synchronous>, transform_indices = @transform_16, window_bounds = array<i64: 32, 128>}, {pipeline_mode = #tpu.pipeline_mode<synchronous>, transform_indices = @transform_17, window_bounds = array<i64: 32, 128>}, {pipeline_mode = #tpu.pipeline_mode<synchronous>, transform_indices = @transform_18, window_bounds = array<i64: 32, 128>}, {pipeline_mode = #tpu.pipeline_mode<synchronous>, transform_indices = @transform_19, window_bounds = array<i64: 1, 128>}, {pipeline_mode = #tpu.pipeline_mode<synchronous>, transform_indices = @transform_20, window_bounds = array<i64: 32, 64>}, {pipeline_mode = #tpu.pipeline_mode<synchronous>, transform_indices = @transform_21, window_bounds = array<i64: 1, 64>}, {pipeline_mode = #tpu.pipeline_mode<synchronous>, transform_indices = @transform_22, window_bounds = array<i64: 1, 32>}, {pipeline_mode = #tpu.pipeline_mode<synchronous>, transform_indices = @transform_23, window_bounds = array<i64: 1, 32>}, {transform_indices = @transform_24, window_bounds = array<i64: 1, 2>}, {transform_indices = @transform_25, window_bounds = array<i64: 2, 32>}, {transform_indices = @transform_26, window_bounds = array<i64: 2, 32>}, {transform_indices = @transform_27, window_bounds = array<i64: 2, 32>}, {transform_indices = @transform_28, window_bounds = array<i64: 2, 32>}, {transform_indices = @transform_29, window_bounds = array<i64: 2, 8>}, {transform_indices = @transform_30, window_bounds = array<i64: 2, 32>}]} {
    %c0 = arith.constant 0 : index
    %c0_0 = arith.constant 0 : index
    %0 = vector.load %arg1[%c0, %c0_0] : memref<2x32xf32, #tpu.memory_space<vmem>>, vector<2x32xf32>
    %c0_1 = arith.constant 0 : index
    %c0_2 = arith.constant 0 : index
    %1 = vector.load %arg2[%c0_1, %c0_2] : memref<2x32xf32, #tpu.memory_space<vmem>>, vector<2x32xf32>
    %c0_3 = arith.constant 0 : index
    %c0_4 = arith.constant 0 : index
    %2 = vector.load %arg9[%c0_3, %c0_4] : memref<2x32xf32, #tpu.memory_space<vmem>>, vector<2x32xf32>
    %c0_5 = arith.constant 0 : index
    %c0_6 = arith.constant 0 : index
    %3 = vector.load %arg10[%c0_5, %c0_6] : memref<2x32xf32, #tpu.memory_space<vmem>>, vector<2x32xf32>
    %c0_7 = arith.constant 0 : index
    %c0_8 = arith.constant 0 : index
    %4 = vector.load %arg11[%c0_7, %c0_8] : memref<2x32xf32, #tpu.memory_space<vmem>>, vector<2x32xf32>
    %c0_9 = arith.constant 0 : index
    %c0_10 = arith.constant 0 : index
    %5 = vector.load %arg12[%c0_9, %c0_10] : memref<2x32xf32, #tpu.memory_space<vmem>>, vector<2x32xf32>
    %6 = arith.truncf %1 : vector<2x32xf32> to vector<2x32xbf16>
    %c0_11 = arith.constant 0 : index
    %c0_12 = arith.constant 0 : index
    %7 = vector.load %arg13[%c0_11, %c0_12] : memref<32x128xbf16, #tpu.memory_space<vmem>>, vector<32x128xbf16>
    %cst = arith.constant dense<0.000000e+00> : vector<2x128xf32>
    %8 = tpu.matmul %6, %7, %cst {dimension_numbers = #tpu.dot_dimension_numbers<[1], [0], [0], [1], [0, 0, 1, 1], [], []>} : vector<2x32xbf16>, vector<32x128xbf16>, vector<2x128xf32> -> vector<2x128xf32>
    %9 = arith.truncf %0 : vector<2x32xf32> to vector<2x32xbf16>
    %c0_13 = arith.constant 0 : index
    %c0_14 = arith.constant 0 : index
    %10 = vector.load %arg14[%c0_13, %c0_14] : memref<32x128xbf16, #tpu.memory_space<vmem>>, vector<32x128xbf16>
    %cst_15 = arith.constant dense<0.000000e+00> : vector<2x128xf32>
    %11 = tpu.matmul %9, %10, %cst_15 {dimension_numbers = #tpu.dot_dimension_numbers<[1], [0], [0], [1], [0, 0, 1, 1], [], []>} : vector<2x32xbf16>, vector<32x128xbf16>, vector<2x128xf32> -> vector<2x128xf32>
    %12 = arith.addf %8, %11 : vector<2x128xf32>
    %13 = arith.truncf %2 : vector<2x32xf32> to vector<2x32xbf16>
    %c0_16 = arith.constant 0 : index
    %c0_17 = arith.constant 0 : index
    %14 = vector.load %arg15[%c0_16, %c0_17] : memref<32x128xbf16, #tpu.memory_space<vmem>>, vector<32x128xbf16>
    %cst_18 = arith.constant dense<0.000000e+00> : vector<2x128xf32>
    %15 = tpu.matmul %13, %14, %cst_18 {dimension_numbers = #tpu.dot_dimension_numbers<[1], [0], [0], [1], [0, 0, 1, 1], [], []>} : vector<2x32xbf16>, vector<32x128xbf16>, vector<2x128xf32> -> vector<2x128xf32>
    %16 = arith.addf %12, %15 : vector<2x128xf32>
    %c0_19 = arith.constant 0 : index
    %c0_20 = arith.constant 0 : index
    %17 = vector.load %arg16[%c0_19, %c0_20] : memref<1x128xf32, #tpu.memory_space<vmem>>, vector<1x128xf32>
    %18 = vector.broadcast %17 : vector<1x128xf32> to vector<2x128xf32>
    %19 = arith.addf %16, %18 : vector<2x128xf32>
    %20 = vector.extract_strided_slice %19 {offsets = [0, 0], sizes = [2, 32], strides = [1, 1]} : vector<2x128xf32> to vector<2x32xf32>
    %21 = arith.negf %20 : vector<2x32xf32>
    %22 = math.exp %21 : vector<2x32xf32>
    %cst_21 = arith.constant 1.000000e+00 : f32
    %23 = vector.broadcast %cst_21 : f32 to vector<2x32xf32>
    %24 = arith.addf %23, %22 : vector<2x32xf32>
    %25 = arith.divf %23, %24 : vector<2x32xf32>
    %26 = vector.extract_strided_slice %19 {offsets = [0, 32], sizes = [2, 32], strides = [1, 1]} : vector<2x128xf32> to vector<2x32xf32>
    %27 = arith.negf %26 : vector<2x32xf32>
    %28 = math.exp %27 : vector<2x32xf32>
    %cst_22 = arith.constant 1.000000e+00 : f32
    %29 = vector.broadcast %cst_22 : f32 to vector<2x32xf32>
    %30 = arith.addf %29, %28 : vector<2x32xf32>
    %31 = arith.divf %29, %30 : vector<2x32xf32>
    %32 = vector.extract_strided_slice %19 {offsets = [0, 64], sizes = [2, 32], strides = [1, 1]} : vector<2x128xf32> to vector<2x32xf32>
    %33 = math.tanh %32 : vector<2x32xf32>
    %34 = vector.extract_strided_slice %19 {offsets = [0, 96], sizes = [2, 32], strides = [1, 1]} : vector<2x128xf32> to vector<2x32xf32>
    %35 = arith.negf %34 : vector<2x32xf32>
    %36 = math.exp %35 : vector<2x32xf32>
    %cst_23 = arith.constant 1.000000e+00 : f32
    %37 = vector.broadcast %cst_23 : f32 to vector<2x32xf32>
    %38 = arith.addf %37, %36 : vector<2x32xf32>
    %39 = arith.divf %37, %38 : vector<2x32xf32>
    %40 = arith.mulf %31, %3 : vector<2x32xf32>
    %41 = arith.mulf %25, %33 : vector<2x32xf32>
    %42 = arith.addf %40, %41 : vector<2x32xf32>
    %43 = math.tanh %42 : vector<2x32xf32>
    %44 = arith.mulf %39, %43 : vector<2x32xf32>
    %45 = arith.truncf %44 : vector<2x32xf32> to vector<2x32xbf16>
    %c0_24 = arith.constant 0 : index
    %c0_25 = arith.constant 0 : index
    %46 = vector.load %arg21[%c0_24, %c0_25] : memref<32x64xbf16, #tpu.memory_space<vmem>>, vector<32x64xbf16>
    %cst_26 = arith.constant dense<0.000000e+00> : vector<2x64xf32>
    %47 = tpu.matmul %45, %46, %cst_26 {dimension_numbers = #tpu.dot_dimension_numbers<[1], [0], [0], [1], [0, 0, 1, 1], [], []>} : vector<2x32xbf16>, vector<32x64xbf16>, vector<2x64xf32> -> vector<2x64xf32>
    %c0_27 = arith.constant 0 : index
    %c0_28 = arith.constant 0 : index
    %48 = vector.load %arg22[%c0_27, %c0_28] : memref<1x64xf32, #tpu.memory_space<vmem>>, vector<1x64xf32>
    %49 = vector.broadcast %48 : vector<1x64xf32> to vector<2x64xf32>
    %50 = arith.addf %47, %49 : vector<2x64xf32>
    %51 = vector.extract_strided_slice %50 {offsets = [0, 0], sizes = [2, 32], strides = [1, 1]} : vector<2x64xf32> to vector<2x32xf32>
    %52 = vector.extract_strided_slice %50 {offsets = [0, 32], sizes = [2, 32], strides = [1, 1]} : vector<2x64xf32> to vector<2x32xf32>
    %c0_29 = arith.constant 0 : index
    %c0_30 = arith.constant 0 : index
    %c0_31 = arith.constant 0 : index
    %53 = vector.load %arg4[%c0_29, %c0_30, %c0_31] : memref<2x16x32xbf16, #tpu.memory_space<vmem>>, vector<2x16x32xbf16>
    %54 = arith.extf %53 : vector<2x16x32xbf16> to vector<2x16x32xf32>
    %55 = vector.shape_cast %51 : vector<2x32xf32> to vector<2x1x32xf32>
    %56 = vector.broadcast %55 : vector<2x1x32xf32> to vector<2x16x32xf32>
    %57 = arith.addf %54, %56 : vector<2x16x32xf32>
    %58 = math.tanh %57 : vector<2x16x32xf32>
    %c0_32 = arith.constant 0 : index
    %c0_33 = arith.constant 0 : index
    %59 = vector.load %arg23[%c0_32, %c0_33] : memref<1x32xf32, #tpu.memory_space<vmem>>, vector<1x32xf32>
    %60 = vector.shape_cast %59 : vector<1x32xf32> to vector<1x1x32xf32>
    %61 = vector.broadcast %60 : vector<1x1x32xf32> to vector<2x16x32xf32>
    %62 = arith.mulf %58, %61 : vector<2x16x32xf32>
    %cst_34 = arith.constant dense<0.000000e+00> : vector<2x16xf32>
    %63 = vector.multi_reduction <add>, %62, %cst_34 [2] : vector<2x16x32xf32> to vector<2x16xf32>
    %c0_35 = arith.constant 0 : index
    %c0_36 = arith.constant 0 : index
    %64 = memref.load %arg25[%c0_35, %c0_36] : memref<1x2xf32, #tpu.memory_space<smem>>
    %65 = vector.broadcast %64 : f32 to vector<2x16xf32>
    %66 = arith.addf %63, %65 : vector<2x16xf32>
    %cst_37 = arith.constant dense<0xFF800000> : vector<2xf32>
    %67 = vector.multi_reduction <maximumf>, %66, %cst_37 [1] : vector<2x16xf32> to vector<2xf32>
    %68 = vector.shape_cast %67 : vector<2xf32> to vector<2x1xf32>
    %69 = vector.broadcast %68 : vector<2x1xf32> to vector<2x16xf32>
    %70 = arith.subf %66, %69 : vector<2x16xf32>
    %71 = math.exp %70 : vector<2x16xf32>
    %cst_38 = arith.constant dense<0.000000e+00> : vector<2xf32>
    %72 = vector.multi_reduction <add>, %71, %cst_38 [1] : vector<2x16xf32> to vector<2xf32>
    %73 = vector.shape_cast %72 : vector<2xf32> to vector<2x1xf32>
    %74 = vector.broadcast %73 : vector<2x1xf32> to vector<2x16xf32>
    %75 = arith.divf %71, %74 : vector<2x16xf32>
    %76 = vector.shape_cast %75 : vector<2x16xf32> to vector<2x16x1xf32>
    %c0_39 = arith.constant 0 : index
    %c0_40 = arith.constant 0 : index
    %c0_41 = arith.constant 0 : index
    %77 = vector.load %arg3[%c0_39, %c0_40, %c0_41] : memref<2x16x32xbf16, #tpu.memory_space<vmem>>, vector<2x16x32xbf16>
    %78 = arith.extf %77 : vector<2x16x32xbf16> to vector<2x16x32xf32>
    %79 = vector.broadcast %76 : vector<2x16x1xf32> to vector<2x16x32xf32>
    %80 = arith.mulf %79, %78 : vector<2x16x32xf32>
    %cst_42 = arith.constant dense<0.000000e+00> : vector<2x32xf32>
    %81 = vector.multi_reduction <add>, %80, %cst_42 [1] : vector<2x16x32xf32> to vector<2x32xf32>
    %c0_43 = arith.constant 0 : index
    %c0_44 = arith.constant 0 : index
    %c0_45 = arith.constant 0 : index
    %82 = vector.load %arg6[%c0_43, %c0_44, %c0_45] : memref<2x8x32xbf16, #tpu.memory_space<vmem>>, vector<2x8x32xbf16>
    %83 = arith.extf %82 : vector<2x8x32xbf16> to vector<2x8x32xf32>
    %84 = vector.shape_cast %52 : vector<2x32xf32> to vector<2x1x32xf32>
    %85 = vector.broadcast %84 : vector<2x1x32xf32> to vector<2x8x32xf32>
    %86 = arith.addf %83, %85 : vector<2x8x32xf32>
    %87 = math.tanh %86 : vector<2x8x32xf32>
    %c0_46 = arith.constant 0 : index
    %c0_47 = arith.constant 0 : index
    %88 = vector.load %arg24[%c0_46, %c0_47] : memref<1x32xf32, #tpu.memory_space<vmem>>, vector<1x32xf32>
    %89 = vector.shape_cast %88 : vector<1x32xf32> to vector<1x1x32xf32>
    %90 = vector.broadcast %89 : vector<1x1x32xf32> to vector<2x8x32xf32>
    %91 = arith.mulf %87, %90 : vector<2x8x32xf32>
    %cst_48 = arith.constant dense<0.000000e+00> : vector<2x8xf32>
    %92 = vector.multi_reduction <add>, %91, %cst_48 [2] : vector<2x8x32xf32> to vector<2x8xf32>
    %c0_49 = arith.constant 0 : index
    %c1 = arith.constant 1 : index
    %93 = memref.load %arg25[%c0_49, %c1] : memref<1x2xf32, #tpu.memory_space<smem>>
    %94 = vector.broadcast %93 : f32 to vector<2x8xf32>
    %95 = arith.addf %92, %94 : vector<2x8xf32>
    %c0_50 = arith.constant 0 : index
    %c0_51 = arith.constant 0 : index
    %96 = vector.load %arg7[%c0_50, %c0_51] : memref<2x8xf32, #tpu.memory_space<vmem>>, vector<2x8xf32>
    %cst_52 = arith.constant 5.000000e-01 : f32
    %97 = vector.broadcast %cst_52 : f32 to vector<2x8xf32>
    %98 = arith.cmpf ogt, %96, %97 : vector<2x8xf32>
    %cst_53 = arith.constant -1.000000e+08 : f32
    %99 = vector.broadcast %cst_53 : f32 to vector<2x8xf32>
    %100 = arith.select %98, %99, %95 : vector<2x8xi1>, vector<2x8xf32>
    %c0_54 = arith.constant 0 : index
    %c0_55 = arith.constant 0 : index
    %101 = vector.load %arg8[%c0_54, %c0_55] : memref<2x8xf32, #tpu.memory_space<vmem>>, vector<2x8xf32>
    %cst_56 = arith.constant 5.000000e-01 : f32
    %102 = vector.broadcast %cst_56 : f32 to vector<2x8xf32>
    %103 = arith.cmpf ogt, %101, %102 : vector<2x8xf32>
    %cst_57 = arith.constant -1.000000e+08 : f32
    %104 = vector.broadcast %cst_57 : f32 to vector<2x8xf32>
    %105 = arith.select %103, %104, %100 : vector<2x8xi1>, vector<2x8xf32>
    %cst_58 = arith.constant dense<0xFF800000> : vector<2xf32>
    %106 = vector.multi_reduction <maximumf>, %100, %cst_58 [1] : vector<2x8xf32> to vector<2xf32>
    %107 = vector.shape_cast %106 : vector<2xf32> to vector<2x1xf32>
    %108 = vector.broadcast %107 : vector<2x1xf32> to vector<2x8xf32>
    %109 = arith.subf %100, %108 : vector<2x8xf32>
    %110 = math.exp %109 : vector<2x8xf32>
    %cst_59 = arith.constant dense<0.000000e+00> : vector<2xf32>
    %111 = vector.multi_reduction <add>, %110, %cst_59 [1] : vector<2x8xf32> to vector<2xf32>
    %112 = vector.shape_cast %111 : vector<2xf32> to vector<2x1xf32>
    %113 = vector.broadcast %112 : vector<2x1xf32> to vector<2x8xf32>
    %114 = arith.divf %110, %113 : vector<2x8xf32>
    %115 = vector.shape_cast %114 : vector<2x8xf32> to vector<2x8x1xf32>
    %c0_60 = arith.constant 0 : index
    %c0_61 = arith.constant 0 : index
    %c0_62 = arith.constant 0 : index
    %116 = vector.load %arg5[%c0_60, %c0_61, %c0_62] : memref<2x8x32xbf16, #tpu.memory_space<vmem>>, vector<2x8x32xbf16>
    %117 = arith.extf %116 : vector<2x8x32xbf16> to vector<2x8x32xf32>
    %118 = vector.broadcast %115 : vector<2x8x1xf32> to vector<2x8x32xf32>
    %119 = arith.mulf %118, %117 : vector<2x8x32xf32>
    %cst_63 = arith.constant dense<0.000000e+00> : vector<2x32xf32>
    %120 = vector.multi_reduction <add>, %119, %cst_63 [1] : vector<2x8x32xf32> to vector<2x32xf32>
    %121 = arith.addf %81, %120 : vector<2x32xf32>
    %122 = arith.truncf %121 : vector<2x32xf32> to vector<2x32xbf16>
    %c0_64 = arith.constant 0 : index
    %c0_65 = arith.constant 0 : index
    %123 = vector.load %arg17[%c0_64, %c0_65] : memref<32x128xbf16, #tpu.memory_space<vmem>>, vector<32x128xbf16>
    %cst_66 = arith.constant dense<0.000000e+00> : vector<2x128xf32>
    %124 = tpu.matmul %122, %123, %cst_66 {dimension_numbers = #tpu.dot_dimension_numbers<[1], [0], [0], [1], [0, 0, 1, 1], [], []>} : vector<2x32xbf16>, vector<32x128xbf16>, vector<2x128xf32> -> vector<2x128xf32>
    %125 = arith.truncf %44 : vector<2x32xf32> to vector<2x32xbf16>
    %c0_67 = arith.constant 0 : index
    %c0_68 = arith.constant 0 : index
    %126 = vector.load %arg18[%c0_67, %c0_68] : memref<32x128xbf16, #tpu.memory_space<vmem>>, vector<32x128xbf16>
    %cst_69 = arith.constant dense<0.000000e+00> : vector<2x128xf32>
    %127 = tpu.matmul %125, %126, %cst_69 {dimension_numbers = #tpu.dot_dimension_numbers<[1], [0], [0], [1], [0, 0, 1, 1], [], []>} : vector<2x32xbf16>, vector<32x128xbf16>, vector<2x128xf32> -> vector<2x128xf32>
    %128 = arith.addf %124, %127 : vector<2x128xf32>
    %129 = arith.truncf %4 : vector<2x32xf32> to vector<2x32xbf16>
    %c0_70 = arith.constant 0 : index
    %c0_71 = arith.constant 0 : index
    %130 = vector.load %arg19[%c0_70, %c0_71] : memref<32x128xbf16, #tpu.memory_space<vmem>>, vector<32x128xbf16>
    %cst_72 = arith.constant dense<0.000000e+00> : vector<2x128xf32>
    %131 = tpu.matmul %129, %130, %cst_72 {dimension_numbers = #tpu.dot_dimension_numbers<[1], [0], [0], [1], [0, 0, 1, 1], [], []>} : vector<2x32xbf16>, vector<32x128xbf16>, vector<2x128xf32> -> vector<2x128xf32>
    %132 = arith.addf %128, %131 : vector<2x128xf32>
    %c0_73 = arith.constant 0 : index
    %c0_74 = arith.constant 0 : index
    %133 = vector.load %arg20[%c0_73, %c0_74] : memref<1x128xf32, #tpu.memory_space<vmem>>, vector<1x128xf32>
    %134 = vector.broadcast %133 : vector<1x128xf32> to vector<2x128xf32>
    %135 = arith.addf %132, %134 : vector<2x128xf32>
    %136 = vector.extract_strided_slice %135 {offsets = [0, 0], sizes = [2, 32], strides = [1, 1]} : vector<2x128xf32> to vector<2x32xf32>
    %137 = arith.negf %136 : vector<2x32xf32>
    %138 = math.exp %137 : vector<2x32xf32>
    %cst_75 = arith.constant 1.000000e+00 : f32
    %139 = vector.broadcast %cst_75 : f32 to vector<2x32xf32>
    %140 = arith.addf %139, %138 : vector<2x32xf32>
    %141 = arith.divf %139, %140 : vector<2x32xf32>
    %142 = vector.extract_strided_slice %135 {offsets = [0, 32], sizes = [2, 32], strides = [1, 1]} : vector<2x128xf32> to vector<2x32xf32>
    %143 = arith.negf %142 : vector<2x32xf32>
    %144 = math.exp %143 : vector<2x32xf32>
    %cst_76 = arith.constant 1.000000e+00 : f32
    %145 = vector.broadcast %cst_76 : f32 to vector<2x32xf32>
    %146 = arith.addf %145, %144 : vector<2x32xf32>
    %147 = arith.divf %145, %146 : vector<2x32xf32>
    %148 = vector.extract_strided_slice %135 {offsets = [0, 64], sizes = [2, 32], strides = [1, 1]} : vector<2x128xf32> to vector<2x32xf32>
    %149 = math.tanh %148 : vector<2x32xf32>
    %150 = vector.extract_strided_slice %135 {offsets = [0, 96], sizes = [2, 32], strides = [1, 1]} : vector<2x128xf32> to vector<2x32xf32>
    %151 = arith.negf %150 : vector<2x32xf32>
    %152 = math.exp %151 : vector<2x32xf32>
    %cst_77 = arith.constant 1.000000e+00 : f32
    %153 = vector.broadcast %cst_77 : f32 to vector<2x32xf32>
    %154 = arith.addf %153, %152 : vector<2x32xf32>
    %155 = arith.divf %153, %154 : vector<2x32xf32>
    %156 = arith.mulf %147, %5 : vector<2x32xf32>
    %157 = arith.mulf %141, %149 : vector<2x32xf32>
    %158 = arith.addf %156, %157 : vector<2x32xf32>
    %159 = math.tanh %158 : vector<2x32xf32>
    %160 = arith.mulf %155, %159 : vector<2x32xf32>
    %c0_78 = arith.constant 0 : index
    %c0_79 = arith.constant 0 : index
    %161 = vector.load %arg26[%c0_78, %c0_79] : memref<2x32xf32, #tpu.memory_space<vmem>>, vector<2x32xf32>
    tpu.vector_store %arg26[%c0_78, %c0_79], %44 {strides = array<i32>} : memref<2x32xf32, #tpu.memory_space<vmem>>, vector<2x32xf32>,
    %c0_80 = arith.constant 0 : index
    %c0_81 = arith.constant 0 : index
    %162 = vector.load %arg27[%c0_80, %c0_81] : memref<2x32xf32, #tpu.memory_space<vmem>>, vector<2x32xf32>
    tpu.vector_store %arg27[%c0_80, %c0_81], %42 {strides = array<i32>} : memref<2x32xf32, #tpu.memory_space<vmem>>, vector<2x32xf32>,
    %c0_82 = arith.constant 0 : index
    %c0_83 = arith.constant 0 : index
    %163 = vector.load %arg28[%c0_82, %c0_83] : memref<2x32xf32, #tpu.memory_space<vmem>>, vector<2x32xf32>
    tpu.vector_store %arg28[%c0_82, %c0_83], %160 {strides = array<i32>} : memref<2x32xf32, #tpu.memory_space<vmem>>, vector<2x32xf32>,
    %c0_84 = arith.constant 0 : index
    %c0_85 = arith.constant 0 : index
    %164 = vector.load %arg29[%c0_84, %c0_85] : memref<2x32xf32, #tpu.memory_space<vmem>>, vector<2x32xf32>
    tpu.vector_store %arg29[%c0_84, %c0_85], %158 {strides = array<i32>} : memref<2x32xf32, #tpu.memory_space<vmem>>, vector<2x32xf32>,
    %c0_86 = arith.constant 0 : index
    %c0_87 = arith.constant 0 : index
    %165 = vector.load %arg30[%c0_86, %c0_87] : memref<2x8xf32, #tpu.memory_space<vmem>>, vector<2x8xf32>
    tpu.vector_store %arg30[%c0_86, %c0_87], %105 {strides = array<i32>} : memref<2x8xf32, #tpu.memory_space<vmem>>, vector<2x8xf32>,
    %c0_88 = arith.constant 0 : index
    %c0_89 = arith.constant 0 : index
    %166 = vector.load %arg31[%c0_88, %c0_89] : memref<2x32xf32, #tpu.memory_space<vmem>>, vector<2x32xf32>
    tpu.vector_store %arg31[%c0_88, %c0_89], %52 {strides = array<i32>} : memref<2x32xf32, #tpu.memory_space<vmem>>, vector<2x32xf32>,
    return
  }
  func.func @transform_0(%arg0: i32) -> (i32, i32) {
    %c0_i32 = arith.constant 0 : i32
    %c0_i32_0 = arith.constant 0 : i32
    return %arg0, %c0_i32 : i32, i32
  }
  func.func @transform_1(%arg0: i32) -> (i32, i32) {
    %c0_i32 = arith.constant 0 : i32
    %c0_i32_0 = arith.constant 0 : i32
    return %arg0, %c0_i32 : i32, i32
  }
  func.func @transform_2(%arg0: i32) -> (i32, i32, i32) {
    %c0_i32 = arith.constant 0 : i32
    %c0_i32_0 = arith.constant 0 : i32
    %c0_i32_1 = arith.constant 0 : i32
    return %arg0, %c0_i32, %c0_i32_0 : i32, i32, i32
  }
  func.func @transform_3(%arg0: i32) -> (i32, i32, i32) {
    %c0_i32 = arith.constant 0 : i32
    %c0_i32_0 = arith.constant 0 : i32
    %c0_i32_1 = arith.constant 0 : i32
    return %arg0, %c0_i32, %c0_i32_0 : i32, i32, i32
  }
  func.func @transform_4(%arg0: i32) -> (i32, i32, i32) {
    %c0_i32 = arith.constant 0 : i32
    %c0_i32_0 = arith.constant 0 : i32
    %c0_i32_1 = arith.constant 0 : i32
    return %arg0, %c0_i32, %c0_i32_0 : i32, i32, i32
  }
  func.func @transform_5(%arg0: i32) -> (i32, i32, i32) {
    %c0_i32 = arith.constant 0 : i32
    %c0_i32_0 = arith.constant 0 : i32
    %c0_i32_1 = arith.constant 0 : i32
    return %arg0, %c0_i32, %c0_i32_0 : i32, i32, i32
  }
  func.func @transform_6(%arg0: i32) -> (i32, i32) {
    %c0_i32 = arith.constant 0 : i32
    %c0_i32_0 = arith.constant 0 : i32
    return %arg0, %c0_i32 : i32, i32
  }
  func.func @transform_7(%arg0: i32) -> (i32, i32) {
    %c0_i32 = arith.constant 0 : i32
    %c0_i32_0 = arith.constant 0 : i32
    return %arg0, %c0_i32 : i32, i32
  }
  func.func @transform_8(%arg0: i32) -> (i32, i32) {
    %c0_i32 = arith.constant 0 : i32
    %c0_i32_0 = arith.constant 0 : i32
    return %arg0, %c0_i32 : i32, i32
  }
  func.func @transform_9(%arg0: i32) -> (i32, i32) {
    %c0_i32 = arith.constant 0 : i32
    %c0_i32_0 = arith.constant 0 : i32
    return %arg0, %c0_i32 : i32, i32
  }
  func.func @transform_10(%arg0: i32) -> (i32, i32) {
    %c0_i32 = arith.constant 0 : i32
    %c0_i32_0 = arith.constant 0 : i32
    return %arg0, %c0_i32 : i32, i32
  }
  func.func @transform_11(%arg0: i32) -> (i32, i32) {
    %c0_i32 = arith.constant 0 : i32
    %c0_i32_0 = arith.constant 0 : i32
    return %arg0, %c0_i32 : i32, i32
  }
  func.func @transform_12(%arg0: i32) -> (i32, i32) {
    %c0_i32 = arith.constant 0 : i32
    %c0_i32_0 = arith.constant 0 : i32
    %c0_i32_1 = arith.constant 0 : i32
    return %c0_i32, %c0_i32_0 : i32, i32
  }
  func.func @transform_13(%arg0: i32) -> (i32, i32) {
    %c0_i32 = arith.constant 0 : i32
    %c0_i32_0 = arith.constant 0 : i32
    %c0_i32_1 = arith.constant 0 : i32
    return %c0_i32, %c0_i32_0 : i32, i32
  }
  func.func @transform_14(%arg0: i32) -> (i32, i32) {
    %c0_i32 = arith.constant 0 : i32
    %c0_i32_0 = arith.constant 0 : i32
    %c0_i32_1 = arith.constant 0 : i32
    return %c0_i32, %c0_i32_0 : i32, i32
  }
  func.func @transform_15(%arg0: i32) -> (i32, i32) {
    %c0_i32 = arith.constant 0 : i32
    %c0_i32_0 = arith.constant 0 : i32
    %c0_i32_1 = arith.constant 0 : i32
    return %c0_i32, %c0_i32_0 : i32, i32
  }
  func.func @transform_16(%arg0: i32) -> (i32, i32) {
    %c0_i32 = arith.constant 0 : i32
    %c0_i32_0 = arith.constant 0 : i32
    %c0_i32_1 = arith.constant 0 : i32
    return %c0_i32, %c0_i32_0 : i32, i32
  }
  func.func @transform_17(%arg0: i32) -> (i32, i32) {
    %c0_i32 = arith.constant 0 : i32
    %c0_i32_0 = arith.constant 0 : i32
    %c0_i32_1 = arith.constant 0 : i32
    return %c0_i32, %c0_i32_0 : i32, i32
  }
  func.func @transform_18(%arg0: i32) -> (i32, i32) {
    %c0_i32 = arith.constant 0 : i32
    %c0_i32_0 = arith.constant 0 : i32
    %c0_i32_1 = arith.constant 0 : i32
    return %c0_i32, %c0_i32_0 : i32, i32
  }
  func.func @transform_19(%arg0: i32) -> (i32, i32) {
    %c0_i32 = arith.constant 0 : i32
    %c0_i32_0 = arith.constant 0 : i32
    %c0_i32_1 = arith.constant 0 : i32
    return %c0_i32, %c0_i32_0 : i32, i32
  }
  func.func @transform_20(%arg0: i32) -> (i32, i32) {
    %c0_i32 = arith.constant 0 : i32
    %c0_i32_0 = arith.constant 0 : i32
    %c0_i32_1 = arith.constant 0 : i32
    return %c0_i32, %c0_i32_0 : i32, i32
  }
  func.func @transform_21(%arg0: i32) -> (i32, i32) {
    %c0_i32 = arith.constant 0 : i32
    %c0_i32_0 = arith.constant 0 : i32
    %c0_i32_1 = arith.constant 0 : i32
    return %c0_i32, %c0_i32_0 : i32, i32
  }
  func.func @transform_22(%arg0: i32) -> (i32, i32) {
    %c0_i32 = arith.constant 0 : i32
    %c0_i32_0 = arith.constant 0 : i32
    %c0_i32_1 = arith.constant 0 : i32
    return %c0_i32, %c0_i32_0 : i32, i32
  }
  func.func @transform_23(%arg0: i32) -> (i32, i32) {
    %c0_i32 = arith.constant 0 : i32
    %c0_i32_0 = arith.constant 0 : i32
    %c0_i32_1 = arith.constant 0 : i32
    return %c0_i32, %c0_i32_0 : i32, i32
  }
  func.func @transform_24(%arg0: i32) -> (i32, i32) {
    %c0_i32 = arith.constant 0 : i32
    %c0_i32_0 = arith.constant 0 : i32
    %c0_i32_1 = arith.constant 0 : i32
    return %c0_i32, %c0_i32_0 : i32, i32
  }
  func.func @transform_25(%arg0: i32) -> (i32, i32) {
    %c0_i32 = arith.constant 0 : i32
    %c0_i32_0 = arith.constant 0 : i32
    return %arg0, %c0_i32 : i32, i32
  }
  func.func @transform_26(%arg0: i32) -> (i32, i32) {
    %c0_i32 = arith.constant 0 : i32
    %c0_i32_0 = arith.constant 0 : i32
    return %arg0, %c0_i32 : i32, i32
  }
  func.func @transform_27(%arg0: i32) -> (i32, i32) {
    %c0_i32 = arith.constant 0 : i32
    %c0_i32_0 = arith.constant 0 : i32
    return %arg0, %c0_i32 : i32, i32
  }
  func.func @transform_28(%arg0: i32) -> (i32, i32) {
    %c0_i32 = arith.constant 0 : i32
    %c0_i32_0 = arith.constant 0 : i32
    return %arg0, %c0_i32 : i32, i32
  }
  func.func @transform_29(%arg0: i32) -> (i32, i32) {
    %c0_i32 = arith.constant 0 : i32
    %c0_i32_0 = arith.constant 0 : i32
    return %arg0, %c0_i32 : i32, i32
  }
  func.func @transform_30(%arg0: i32) -> (i32, i32) {
    %c0_i32 = arith.constant 0 : i32
    %c0_i32_0 = arith.constant 0 : i32
    return %arg0, %c0_i32 : i32, i32
  }
}

</mosaic_0001>

<bundles_post_ra>
// kernel: tpu_custom_call.1
= control target key start
LH: loop header
LB: loop body
LE: loop exit
PB: predicated region body
PF: predicated region fallthrough
CT: control target
= control target key end

     0   :  { %s2112_s6 = smov 1   ;;  %s2113_s10 = smov 2   ;;  %s2601_s0 = inlined_call_operand.smem [shape: u32[31], index: -1, kind: input, shape index: {}] }
   0x1   :  { %s2181_s5 = sld [smem:[%s2601_s0]]   ;;  %s2114_s14 = smov 3  }
   0x2   :  { %s2186_s9 = sld [smem:[%s2601_s0 + %s2112_s6]]   ;;  %s2115_s18 = smov 4  }
   0x3   :  { %s2191_s13 = sld [smem:[%s2601_s0 + %s2113_s10]]   ;;  %s2116_s22 = smov 5  }
   0x4   :  { %s2196_s17 = sld [smem:[%s2601_s0 + %s2114_s14]]   ;;  %s2117_s26 = smov 6  }
   0x5   :  { %s2201_s21 = sld [smem:[%s2601_s0 + %s2115_s18]]   ;;  %s2118_s30 = smov 7  }
   0x6   :  { %s2206_s25 = sld [smem:[%s2601_s0 + %s2116_s22]]   ;;  %s2119_s4 = smov 8  }
   0x7   :  { %s2211_s29 = sld [smem:[%s2601_s0 + %s2117_s26]]   ;;  %s2120_s10 = smov 9  }
   0x8   :  { %s2216_s3 = sld [smem:[%s2601_s0 + %s2118_s30]]   ;;  %s2121_s15 = smov 10  }
   0x9   :  { %s2221_s8 = sld [smem:[%s2601_s0 + %s2119_s4]]   ;;  %s2122_s20 = smov 11  }
   0xa   :  { %s2226_s14 = sld [smem:[%s2601_s0 + %s2120_s10]]   ;;  %s2123_s26 = smov 12  }
   0xb   :  { %s2231_s19 = sld [smem:[%s2601_s0 + %s2121_s15]]   ;;  %s2124_s1 = smov 13  }
   0xc   :  { %s2236_s24 = sld [smem:[%s2601_s0 + %s2122_s20]]   ;;  %s2125_s7 = smov 14  }
   0xd   :  { %s2241_s30 = sld [smem:[%s2601_s0 + %s2123_s26]]   ;;  %s2126_s15 = smov 15  }
   0xe   :  { %s2246_s6 = sld [smem:[%s2601_s0 + %s2124_s1]]   ;;  %s2127_s22 = smov 16  }
   0xf   :  { %s2251_s12 = sld [smem:[%s2601_s0 + %s2125_s7]]   ;;  %s2128_s28 = smov 17  }
  0x10   :  { %s2256_s20 = sld [smem:[%s2601_s0 + %s2126_s15]]   ;;  %s2129_s7 = smov 18  }
  0x11   :  { %s2261_s27 = sld [smem:[%s2601_s0 + %s2127_s22]]   ;;  %s2130_s15 = smov 19  }
  0x12   :  { %s2266_s4 = sld [smem:[%s2601_s0 + %s2128_s28]]   ;;  %s2131_s22 = smov 20  }
  0x13   :  { %2610 = sst [smem:[#allocation53_spill]] %s2241_s30  ;;  %s2132_s28 = smov 21  }
  0x14   :  { %2611 = sst [smem:[#allocation54_spill]] %s2246_s6 }
  0x15   :  { %2612 = sst [smem:[#allocation55_spill]] %s2251_s12 }
  0x16   :  { %s2271_s12 = sld [smem:[%s2601_s0 + %s2129_s7]]   ;;  %s2133_s7 = smov 22  }
  0x17   :  { %s2276_s30 = sld [smem:[%s2601_s0 + %s2130_s15]]   ;;  %s2134_s15 = smov 23  }
  0x18   :  { %2613 = sst [smem:[#allocation56_spill]] %s2266_s4 }
  0x19   :  { %s2281_s6 = sld [smem:[%s2601_s0 + %s2131_s22]]   ;;  %s2135_s22 = smov 24  }
  0x1a   :  { %s2286_s4 = sld [smem:[%s2601_s0 + %s2132_s28]]   ;;  %s2136_s28 = smov 25  }
  0x1c   :  { %2614 = sst [smem:[#allocation57_spill]] %s2271_s12 }
  0x1d   :  { %2615 = sst [smem:[#allocation58_spill]] %s2276_s30 }
  0x1e   :  { %s2291_s12 = sld [smem:[%s2601_s0 + %s2133_s7]]   ;;  %s2137_s7 = smov 26  }
  0x1f   :  { %2616 = sst [smem:[#allocation59_spill]] %s2281_s6 }
  0x20   :  { %2617 = sst [smem:[#allocation60_spill]] %s2286_s4 }
  0x21   :  { %s2296_s30 = sld [smem:[%s2601_s0 + %s2134_s15]]   ;;  %s2138_s15 = smov 27  }
  0x22   :  { %s2301_s6 = sld [smem:[%s2601_s0 + %s2135_s22]]   ;;  %s2139_s22 = smov 28  }
  0x23   :  { %s2306_s4 = sld [smem:[%s2601_s0 + %s2136_s28]]   ;;  %s2140_s28 = smov 29  }
  0x24   :  { %2618 = sst [smem:[#allocation61_spill]] %s2291_s12 }
  0x25   :  { %s2311_s12 = sld [smem:[%s2601_s0 + %s2137_s7]]   ;;  %s2141_s7 = smov 30  }
  0x27   :  { %2619 = sst [smem:[#allocation62_spill]] %s2296_s30 }
  0x28   :  { %2620 = sst [smem:[#allocation63_spill]] %s2301_s6 }
  0x29   :  { %2621 = sst [smem:[#allocation64_spill]] %s2306_s4 }
  0x2a   :  { %s2316_s30 = sld [smem:[%s2601_s0 + %s2138_s15]]  }
  0x2b   :  { %2622 = sst [smem:[#allocation65_spill]] %s2311_s12 }
  0x2c   :  { %s2321_s6 = sld [smem:[%s2601_s0 + %s2139_s22]]  }
  0x2d   :  { %s2326_s4 = sld [smem:[%s2601_s0 + %s2140_s28]]  }
  0x2e   :  { %s2331_s12 = sld [smem:[%s2601_s0 + %s2141_s7]]  }
  0x2f   :  { %67 = vsyncpa [#allocation3], 0 }
  0x30   :  { %68 = vsyncpa [#allocation7], 0 }
  0x31   :  { %69 = vsyncpa [#allocation10], 0 }
  0x32   :  { %70 = vsyncpa [#allocation13], 0 }
  0x33   :  { %71 = vsyncpa [#allocation16], 0 }
  0x34   :  { %72 = vsyncpa [#allocation19], 0 }
  0x35   :  { %73 = vsyncpa [#allocation22], 0 }
  0x36   :  { %74 = vsyncpa [#allocation25], 0 }
  0x37   :  { %75 = vsyncpa [#allocation28], 0 }
  0x38   :  { %76 = vsyncpa [#allocation5], 0 }
  0x39   :  { %77 = vsyncpa [#allocation4], 0 }
  0x3a   :  { %78 = vsyncpa [#allocation32], 0 }
  0x3b   :  { %79 = vsyncpa [#allocation35], 0 }
  0x3c   :  { %80 = vsyncpa [#allocation38], 0  ;;  %s2142_s15 = smov [#allocation6]   ;;  %s1588_s16 = scalar_lea.hbm %s2186_s9, 32 }
  0x3d   :  { %s97_s0 = sshll.u32 %s2142_s15, 4  ;;  %p1589_p0 = scmp.ne.s32.totalorder %s2186_s9, %s1588_s16  ;;  %s98_s0 = int_to_ptr.vmem [resolvable:$true] %s97_s0 }
  0x3e   :  { %p1592_p1 = scmp.lt.u32.totalorder %s1588_s16, %s2186_s9 }
  0x40   :  { %p1594_p2 = pnand %p1592_p1, %p1589_p0 }
  0x42   :  { %1597 = shalt.err (!%p1594_p2)
}
  0x43   :  { %s1598_s18 = scalar_lea.vmem %s98_s0, 32  ;;  %p1603_p4 = scmp.lt.s32.totalorder %s98_s0, %s98_s0 }
  0x44   :  { %p1599_p3 = scmp.ne.s32.totalorder %s98_s0, %s1598_s18  ;;  %p1604_p5 = scmp.lt.s32.totalorder %s1598_s18, %s1598_s18 }
  0x46   :  { %p1605_p6 = por %p1604_p5, %p1603_p4 }
  0x48   :  { %p1606_p7 = pnand %p1605_p6, %p1599_p3 }
  0x4a   :  { %1609 = shalt.err (!%p1606_p7)
}
  0x4b   :  { %100 = dma.hbm_to_vmem [thread:$0]  %s2186_s9, 32, %s98_s0, [#allocation7]  }
  0x4c   :  { %s2143_s22 = smov [#allocation9]   ;;  %s2144_s26 = smov [#allocation12]  }
  0x4d   :  { %s118_s23 = sshll.u32 %s2143_s22, 4  ;;  %s142_s28 = sshll.u32 %s2144_s26, 4  ;;  %s119_s23 = int_to_ptr.vmem [resolvable:$true] %s118_s23  ;;  %s143_s28 = int_to_ptr.vmem [resolvable:$true] %s142_s28 }
  0x4e   :  { %s1610_s1 = scalar_lea.hbm %s2196_s17, 256 }
  0x4f   :  { %p1611_p8 = scmp.ne.s32.totalorder %s2196_s17, %s1610_s1  ;;  %p1614_p9 = scmp.lt.u32.totalorder %s1610_s1, %s2196_s17 }
  0x51   :  { %p1616_p10 = pnand %p1614_p9, %p1611_p8 }
  0x53   :  { %1619 = shalt.err (!%p1616_p10)
}
  0x54   :  { %s1620_s2 = scalar_lea.vmem %s119_s23, 256  ;;  %p1625_p12 = scmp.lt.s32.totalorder %s119_s23, %s119_s23 }
  0x55   :  { %p1621_p11 = scmp.ne.s32.totalorder %s119_s23, %s1620_s2  ;;  %p1626_p13 = scmp.lt.s32.totalorder %s1620_s2, %s1620_s2 }
  0x57   :  { %p1627_p0 = por %p1626_p13, %p1625_p12 }
  0x59   :  { %p1628_p1 = pnand %p1627_p0, %p1621_p11 }
  0x5b   :  { %1631 = shalt.err (!%p1628_p1)
}
  0x5c   :  { %s2145_s7 = smov 64   ;;  %s2146_s9 = smov 4  }
  0x5d   :  { %124 = dma.hbm_to_vmem [thread:$0]  %s2196_s17, 256, %s119_s23, [#allocation10], %s2145_s7, %s2145_s7, %s2146_s9  }
  0x5e   :  { %s1632_s10 = scalar_lea.hbm %s2206_s25, 128 }
  0x5f   :  { %p1633_p2 = scmp.ne.s32.totalorder %s2206_s25, %s1632_s10  ;;  %p1636_p3 = scmp.lt.u32.totalorder %s1632_s10, %s2206_s25 }
  0x61   :  { %p1638_p4 = pnand %p1636_p3, %p1633_p2 }
  0x63   :  { %1641 = shalt.err (!%p1638_p4)
}
  0x64   :  { %s1642_s11 = scalar_lea.vmem %s143_s28, 128  ;;  %p1647_p6 = scmp.lt.s32.totalorder %s143_s28, %s143_s28 }
  0x65   :  { %p1643_p5 = scmp.ne.s32.totalorder %s143_s28, %s1642_s11  ;;  %p1648_p7 = scmp.lt.s32.totalorder %s1642_s11, %s1642_s11 }
  0x67   :  { %p1649_p8 = por %p1648_p7, %p1647_p6 }
  0x69   :  { %p1650_p9 = pnand %p1649_p8, %p1643_p5 }
  0x6b   :  { %1653 = shalt.err (!%p1650_p9)
}
  0x6c   :  { %148 = dma.hbm_to_vmem [thread:$0]  %s2206_s25, 128, %s143_s28, [#allocation13], %s2145_s7, %s2145_s7, %s2146_s9  }
  0x6d   :  { %s2147_s17 = smov [#allocation15]   ;;  %s2148_s0 = smov [#allocation18]  }
  0x6e   :  { %s165_s15 = sshll.u32 %s2147_s17, 4  ;;  %s185_s16 = sshll.u32 %s2148_s0, 4  ;;  %s166_s15 = int_to_ptr.vmem [resolvable:$true] %s165_s15  ;;  %s186_s16 = int_to_ptr.vmem [resolvable:$true] %s185_s16 }
  0x6f   :  { %s1654_s18 = scalar_lea.hbm %s2216_s3, 32 }
  0x70   :  { %p1655_p10 = scmp.ne.s32.totalorder %s2216_s3, %s1654_s18  ;;  %p1658_p11 = scmp.lt.u32.totalorder %s1654_s18, %s2216_s3 }
  0x72   :  { %p1660_p12 = pnand %p1658_p11, %p1655_p10 }
  0x74   :  { %1663 = shalt.err (!%p1660_p12)
}
  0x75   :  { %s1664_s22 = scalar_lea.vmem %s166_s15, 32  ;;  %p1669_p0 = scmp.lt.s32.totalorder %s166_s15, %s166_s15 }
  0x76   :  { %p1665_p13 = scmp.ne.s32.totalorder %s166_s15, %s1664_s22  ;;  %p1670_p1 = scmp.lt.s32.totalorder %s1664_s22, %s1664_s22 }
  0x78   :  { %p1671_p2 = por %p1670_p1, %p1669_p0 }
  0x7a   :  { %p1672_p3 = pnand %p1671_p2, %p1665_p13 }
  0x7c   :  { %1675 = shalt.err (!%p1672_p3)
}
  0x7d   :  { %168 = dma.hbm_to_vmem [thread:$0]  %s2216_s3, 32, %s166_s15, [#allocation16]  }
  0x7e   :  { %s1676_s25 = scalar_lea.hbm %s2226_s14, 32 }
  0x7f   :  { %p1677_p4 = scmp.ne.s32.totalorder %s2226_s14, %s1676_s25  ;;  %p1680_p5 = scmp.lt.u32.totalorder %s1676_s25, %s2226_s14 }
  0x81   :  { %p1682_p6 = pnand %p1680_p5, %p1677_p4 }
  0x83   :  { %1685 = shalt.err (!%p1682_p6)
}
  0x84   :  { %s1686_s23 = scalar_lea.vmem %s186_s16, 32  ;;  %p1691_p8 = scmp.lt.s32.totalorder %s186_s16, %s186_s16 }
  0x85   :  { %p1687_p7 = scmp.ne.s32.totalorder %s186_s16, %s1686_s23  ;;  %p1692_p9 = scmp.lt.s32.totalorder %s1686_s23, %s1686_s23 }
  0x87   :  { %p1693_p10 = por %p1692_p9, %p1691_p8 }
  0x89   :  { %p1694_p11 = pnand %p1693_p10, %p1687_p7 }
  0x8b   :  { %1697 = shalt.err (!%p1694_p11)
}
  0x8c   :  { %188 = dma.hbm_to_vmem [thread:$0]  %s2226_s14, 32, %s186_s16, [#allocation19]  }
  0x8d   :  { %s2149_s26 = smov [#allocation21]   ;;  %s2150_s28 = smov [#allocation24]  }
  0x8e   :  { %s205_s3 = sshll.u32 %s2149_s26, 4  ;;  %s230_s1 = sshll.u32 %s2150_s28, 4  ;;  %s206_s3 = int_to_ptr.vmem [resolvable:$true] %s205_s3  ;;  %s231_s1 = int_to_ptr.vmem [resolvable:$true] %s230_s1 }
  0x8f   :  { %s1698_s2 = scalar_lea.hbm %s2236_s24, 32 }
  0x90   :  { %p1699_p12 = scmp.ne.s32.totalorder %s2236_s24, %s1698_s2  ;;  %p1702_p13 = scmp.lt.u32.totalorder %s1698_s2, %s2236_s24 }
  0x92   :  { %p1704_p0 = pnand %p1702_p13, %p1699_p12 }
  0x94   :  { %1707 = shalt.err (!%p1704_p0)
}
  0x95   :  { %s1708_s10 = scalar_lea.vmem %s206_s3, 32  ;;  %p1713_p2 = scmp.lt.s32.totalorder %s206_s3, %s206_s3 }
  0x96   :  { %p1709_p1 = scmp.ne.s32.totalorder %s206_s3, %s1708_s10  ;;  %p1714_p3 = scmp.lt.s32.totalorder %s1708_s10, %s1708_s10 }
  0x98   :  { %p1715_p4 = por %p1714_p3, %p1713_p2 }
  0x9a   :  { %p1716_p5 = pnand %p1715_p4, %p1709_p1 }
  0x9c   :  { %1719 = shalt.err (!%p1716_p5)
}
  0x9d   :  { %208 = dma.hbm_to_vmem [thread:$0]  %s2236_s24, 32, %s206_s3, [#allocation22]  }
  0x9e   :  { %s1720_s14 = scalar_lea.hbm %s2261_s27, 256 }
  0x9f   :  { %p1721_p6 = scmp.ne.s32.totalorder %s2261_s27, %s1720_s14  ;;  %p1724_p7 = scmp.lt.u32.totalorder %s1720_s14, %s2261_s27 }
  0xa1   :  { %p1726_p8 = pnand %p1724_p7, %p1721_p6 }
  0xa3   :  { %1729 = shalt.err (!%p1726_p8)
}
  0xa4   :  { %s1730_s11 = scalar_lea.vmem %s231_s1, 256  ;;  %p1735_p10 = scmp.lt.s32.totalorder %s231_s1, %s231_s1 }
  0xa5   :  { %p1731_p9 = scmp.ne.s32.totalorder %s231_s1, %s1730_s11  ;;  %p1736_p11 = scmp.lt.s32.totalorder %s1730_s11, %s1730_s11 }
  0xa7   :  { %p1737_p12 = por %p1736_p11, %p1735_p10 }
  0xa9   :  { %p1738_p13 = pnand %p1737_p12, %p1731_p9 }
  0xab   :  { %1741 = shalt.err (!%p1738_p13)
}
  0xac   :  { %236 = dma.hbm_to_vmem [thread:$0]  %s2261_s27, 256, %s231_s1, [#allocation25], %s2145_s7, %s2145_s7, %s2146_s9  }
  0xad   :  { %s2151_s24 = smov [#allocation2]   ;;  %s2152_s15 = smov [#allocation8]  }
  0xae   :  { %s87_s17 = sshll.u32 %s2151_s24, 4  ;;  %s106_s0 = sshll.u32 %s2152_s15, 4  ;;  %s88_s17 = int_to_ptr.vmem [resolvable:$true] %s87_s17  ;;  %s107_s0 = int_to_ptr.vmem [resolvable:$true] %s106_s0 }
  0xaf   :  { %s1742_s16 = scalar_lea.hbm %s2181_s5, 32 }
  0xb0   :  { %p1743_p0 = scmp.ne.s32.totalorder %s2181_s5, %s1742_s16  ;;  %p1746_p1 = scmp.lt.u32.totalorder %s1742_s16, %s2181_s5 }
  0xb2   :  { %p1748_p2 = pnand %p1746_p1, %p1743_p0 }
  0xb4   :  { %1751 = shalt.err (!%p1748_p2)
}
  0xb5   :  { %s1752_s18 = scalar_lea.vmem %s88_s17, 32  ;;  %p1757_p4 = scmp.lt.s32.totalorder %s88_s17, %s88_s17 }
  0xb6   :  { %p1753_p3 = scmp.ne.s32.totalorder %s88_s17, %s1752_s18  ;;  %p1758_p5 = scmp.lt.s32.totalorder %s1752_s18, %s1752_s18 }
  0xb8   :  { %p1759_p6 = por %p1758_p5, %p1757_p4 }
  0xba   :  { %p1760_p7 = pnand %p1759_p6, %p1753_p3 }
  0xbc   :  { %1763 = shalt.err (!%p1760_p7)
}
  0xbd   :  { %90 = dma.hbm_to_vmem [thread:$0]  %s2181_s5, 32, %s88_s17, [#allocation3]  }
  0xbe   :  { %s1764_s27 = scalar_lea.hbm %s2191_s13, 256 }
  0xbf   :  { %p1765_p8 = scmp.ne.s32.totalorder %s2191_s13, %s1764_s27  ;;  %p1768_p9 = scmp.lt.u32.totalorder %s1764_s27, %s2191_s13 }
  0xc1   :  { %p1770_p10 = pnand %p1768_p9, %p1765_p8 }
  0xc3   :  { %1773 = shalt.err (!%p1770_p10)
}
  0xc4   :  { %s1774_s22 = scalar_lea.vmem %s107_s0, 256  ;;  %p1779_p12 = scmp.lt.s32.totalorder %s107_s0, %s107_s0 }
  0xc5   :  { %p1775_p11 = scmp.ne.s32.totalorder %s107_s0, %s1774_s22  ;;  %p1780_p13 = scmp.lt.s32.totalorder %s1774_s22, %s1774_s22 }
  0xc7   :  { %p1781_p0 = por %p1780_p13, %p1779_p12 }
  0xc9   :  { %p1782_p1 = pnand %p1781_p0, %p1775_p11 }
  0xcb   :  { %1785 = shalt.err (!%p1782_p1)
}
  0xcc   :  { %112 = dma.hbm_to_vmem [thread:$0]  %s2191_s13, 256, %s107_s0, [#allocation7], %s2145_s7, %s2145_s7, %s2146_s9  }
  0xcd   :  { %s2153_s5 = smov [#allocation11]   ;;  %s2154_s23 = smov [#allocation14]  }
  0xce   :  { %s130_s25 = sshll.u32 %s2153_s5, 4  ;;  %s155_s26 = sshll.u32 %s2154_s23, 4  ;;  %s131_s25 = int_to_ptr.vmem [resolvable:$true] %s130_s25  ;;  %s156_s26 = int_to_ptr.vmem [resolvable:$true] %s155_s26 }
  0xcf   :  { %s1786_s3 = scalar_lea.hbm %s2201_s21, 128 }
  0xd0   :  { %p1787_p2 = scmp.ne.s32.totalorder %s2201_s21, %s1786_s3  ;;  %p1790_p3 = scmp.lt.u32.totalorder %s1786_s3, %s2201_s21 }
  0xd2   :  { %p1792_p4 = pnand %p1790_p3, %p1787_p2 }
  0xd4   :  { %1795 = shalt.err (!%p1792_p4)
}
  0xd5   :  { %s1796_s28 = scalar_lea.vmem %s131_s25, 128  ;;  %p1801_p6 = scmp.lt.s32.totalorder %s131_s25, %s131_s25 }
  0xd6   :  { %p1797_p5 = scmp.ne.s32.totalorder %s131_s25, %s1796_s28  ;;  %p1802_p7 = scmp.lt.s32.totalorder %s1796_s28, %s1796_s28 }
  0xd8   :  { %p1803_p8 = por %p1802_p7, %p1801_p6 }
  0xda   :  { %p1804_p9 = pnand %p1803_p8, %p1797_p5 }
  0xdc   :  { %1807 = shalt.err (!%p1804_p9)
}
  0xdd   :  { %136 = dma.hbm_to_vmem [thread:$0]  %s2201_s21, 128, %s131_s25, [#allocation10], %s2145_s7, %s2145_s7, %s2146_s9  }
  0xde   :  { %s1808_s13 = scalar_lea.hbm %s2211_s29, 32 }
  0xdf   :  { %p1809_p10 = scmp.ne.s32.totalorder %s2211_s29, %s1808_s13  ;;  %p1812_p11 = scmp.lt.u32.totalorder %s1808_s13, %s2211_s29 }
  0xe1   :  { %p1814_p12 = pnand %p1812_p11, %p1809_p10 }
  0xe3   :  { %1817 = shalt.err (!%p1814_p12)
}
  0xe4   :  { %s1818_s1 = scalar_lea.vmem %s156_s26, 32  ;;  %p1823_p0 = scmp.lt.s32.totalorder %s156_s26, %s156_s26 }
  0xe5   :  { %p1819_p13 = scmp.ne.s32.totalorder %s156_s26, %s1818_s1  ;;  %p1824_p1 = scmp.lt.s32.totalorder %s1818_s1, %s1818_s1 }
  0xe7   :  { %p1825_p2 = por %p1824_p1, %p1823_p0 }
  0xe9   :  { %p1826_p3 = pnand %p1825_p2, %p1819_p13 }
  0xeb   :  { %1829 = shalt.err (!%p1826_p3)
}
  0xec   :  { %158 = dma.hbm_to_vmem [thread:$0]  %s2211_s29, 32, %s156_s26, [#allocation13]  }
  0xed   :  { %s2155_s2 = smov [#allocation17]   ;;  %s2156_s10 = smov [#allocation20]  }
  0xee   :  { %s175_s21 = sshll.u32 %s2155_s2, 4  ;;  %s195_s14 = sshll.u32 %s2156_s10, 4  ;;  %s176_s21 = int_to_ptr.vmem [resolvable:$true] %s175_s21  ;;  %s196_s14 = int_to_ptr.vmem [resolvable:$true] %s195_s14 }
  0xef   :  { %s1830_s11 = scalar_lea.hbm %s2221_s8, 32 }
  0xf0   :  { %p1831_p4 = scmp.ne.s32.totalorder %s2221_s8, %s1830_s11  ;;  %p1834_p5 = scmp.lt.u32.totalorder %s1830_s11, %s2221_s8 }
  0xf2   :  { %p1836_p6 = pnand %p1834_p5, %p1831_p4 }
  0xf4   :  { %1839 = shalt.err (!%p1836_p6)
}
  0xf5   :  { %s1840_s24 = scalar_lea.vmem %s176_s21, 32  ;;  %p1845_p8 = scmp.lt.s32.totalorder %s176_s21, %s176_s21 }
  0xf6   :  { %p1841_p7 = scmp.ne.s32.totalorder %s176_s21, %s1840_s24  ;;  %p1846_p9 = scmp.lt.s32.totalorder %s1840_s24, %s1840_s24 }
  0xf8   :  { %p1847_p10 = por %p1846_p9, %p1845_p8 }
  0xfa   :  { %p1848_p11 = pnand %p1847_p10, %p1841_p7 }
  0xfc   :  { %1851 = shalt.err (!%p1848_p11)
}
  0xfd   :  { %178 = dma.hbm_to_vmem [thread:$0]  %s2221_s8, 32, %s176_s21, [#allocation16]  }
  0xfe   :  { %s1852_s29 = scalar_lea.hbm %s2231_s19, 32 }
  0xff   :  { %p1853_p12 = scmp.ne.s32.totalorder %s2231_s19, %s1852_s29  ;;  %p1856_p13 = scmp.lt.u32.totalorder %s1852_s29, %s2231_s19 }
 0x101   :  { %p1858_p0 = pnand %p1856_p13, %p1853_p12 }
 0x103   :  { %1861 = shalt.err (!%p1858_p0)
}
 0x104   :  { %s1862_s17 = scalar_lea.vmem %s196_s14, 32  ;;  %p1867_p2 = scmp.lt.s32.totalorder %s196_s14, %s196_s14 }
 0x105   :  { %p1863_p1 = scmp.ne.s32.totalorder %s196_s14, %s1862_s17  ;;  %p1868_p3 = scmp.lt.s32.totalorder %s1862_s17, %s1862_s17 }
 0x107   :  { %p1869_p4 = por %p1868_p3, %p1867_p2 }
 0x109   :  { %p1870_p5 = pnand %p1869_p4, %p1863_p1 }
 0x10b   :  { %1873 = shalt.err (!%p1870_p5)
}
 0x10c   :  { %198 = dma.hbm_to_vmem [thread:$0]  %s2231_s19, 32, %s196_s14, [#allocation19]  }
 0x10d   :  { %s2157_s15 = smov [#allocation23]   ;;  %s2158_s0 = smov [#allocation26]  }
 0x10e   :  { %s221_s8 = sshll.u32 %s2157_s15, 4  ;;  %s244_s16 = sshll.u32 %s2158_s0, 4  ;;  %s222_s8 = int_to_ptr.vmem [resolvable:$true] %s221_s8  ;;  %s245_s16 = int_to_ptr.vmem [resolvable:$true] %s244_s16 }
 0x10f   :  { %s1874_s18 = scalar_lea.hbm %s2256_s20, 16 }
 0x110   :  { %p1875_p6 = scmp.ne.s32.totalorder %s2256_s20, %s1874_s18  ;;  %p1878_p7 = scmp.lt.u32.totalorder %s1874_s18, %s2256_s20 }
 0x112   :  { %p1880_p8 = pnand %p1878_p7, %p1875_p6 }
 0x114   :  { %1883 = shalt.err (!%p1880_p8)
}
 0x115   :  { %s1884_s27 = scalar_lea.vmem %s222_s8, 16  ;;  %s1888_s22 = scalar_lea.vmem %s222_s8, 32 }
 0x116   :  { %p1885_p9 = scmp.ne.s32.totalorder %s222_s8, %s1884_s27  ;;  %p1889_p10 = scmp.lt.s32.totalorder %s222_s8, %s222_s8 }
 0x117   :  { %p1890_p11 = scmp.lt.s32.totalorder %s1888_s22, %s1884_s27 }
 0x119   :  { %p1891_p12 = por %p1890_p11, %p1889_p10 }
 0x11b   :  { %p1892_p13 = pnand %p1891_p12, %p1885_p9 }
 0x11d   :  { %1895 = shalt.err (!%p1892_p13)
}
 0x11e   :  { %s2623_s19 = sld [smem:[#allocation57_spill]] }
 0x11f   :  { %224 = dma.hbm_to_vmem [thread:$0]  %s2256_s20, 16, %s222_s8, [#allocation22]  }
 0x124   :  { %s1896_s5 = scalar_lea.hbm %s2623_s19, 256 }
 0x125   :  { %p1897_p0 = scmp.ne.s32.totalorder %s2623_s19, %s1896_s5  ;;  %p1900_p1 = scmp.lt.u32.totalorder %s1896_s5, %s2623_s19 }
 0x127   :  { %p1902_p2 = pnand %p1900_p1, %p1897_p0 }
 0x129   :  { %1905 = shalt.err (!%p1902_p2)
}
 0x12a   :  { %s1906_s25 = scalar_lea.vmem %s245_s16, 256  ;;  %p1911_p4 = scmp.lt.s32.totalorder %s245_s16, %s245_s16 }
 0x12b   :  { %p1907_p3 = scmp.ne.s32.totalorder %s245_s16, %s1906_s25  ;;  %p1912_p5 = scmp.lt.s32.totalorder %s1906_s25, %s1906_s25 }
 0x12d   :  { %p1913_p6 = por %p1912_p5, %p1911_p4 }
 0x12f   :  { %p1914_p7 = pnand %p1913_p6, %p1907_p3 }
 0x131   :  { %1917 = shalt.err (!%p1914_p7)
}
 0x132   :  { %s2624_s23 = sld [smem:[#allocation63_spill]]  ;;  %s2625_s26 = sld [smem:[#allocation59_spill]] }
 0x133   :  { %250 = dma.hbm_to_vmem [thread:$0]  %s2623_s19, 256, %s245_s16, [#allocation25], %s2145_s7, %s2145_s7, %s2146_s9  }
 0x134   :  { %s2159_s20 = smov [#allocation27]  }
 0x135   :  { %s258_s3 = sshll.u32 %s2159_s20, 4  ;;  %s259_s3 = int_to_ptr.vmem [resolvable:$true] %s258_s3 }
 0x138   :  { %s277_s28 = sshll.u32 %s2624_s23, 4  ;;  %s1918_s13 = scalar_lea.hbm %s2625_s26, 256  ;;  %s278_s28 = int_to_ptr.vmem [resolvable:$true] %s277_s28 }
 0x139   :  { %p1919_p8 = scmp.ne.s32.totalorder %s2625_s26, %s1918_s13  ;;  %p1922_p9 = scmp.lt.u32.totalorder %s1918_s13, %s2625_s26 }
 0x13b   :  { %p1924_p10 = pnand %p1922_p9, %p1919_p8 }
 0x13d   :  { %1927 = shalt.err (!%p1924_p10)
}
 0x13e   :  { %s1928_s1 = scalar_lea.vmem %s259_s3, 256  ;;  %p1933_p12 = scmp.lt.s32.totalorder %s259_s3, %s259_s3 }
 0x13f   :  { %p1929_p11 = scmp.ne.s32.totalorder %s259_s3, %s1928_s1  ;;  %p1934_p13 = scmp.lt.s32.totalorder %s1928_s1, %s1928_s1 }
 0x141   :  { %p1935_p0 = por %p1934_p13, %p1933_p12 }
 0x143   :  { %p1936_p1 = pnand %p1935_p0, %p1929_p11 }
 0x145   :  { %1939 = shalt.err (!%p1936_p1)
}
 0x146   :  { %264 = dma.hbm_to_vmem [thread:$0]  %s2625_s26, 256, %s259_s3, [#allocation28], %s2145_s7, %s2145_s7, %s2146_s9  }
 0x147   :  { %s1940_s2 = scalar_lea.vmem %s278_s28, 16  ;;  %p1945_p3 = scmp.lt.s32.totalorder %s278_s28, %s278_s28 }
 0x148   :  { %p1941_p2 = scmp.ne.s32.totalorder %s278_s28, %s1940_s2  ;;  %p1946_p4 = scmp.lt.s32.totalorder %s1940_s2, %s1940_s2 }
 0x14a   :  { %p1947_p5 = por %p1946_p4, %p1945_p3 }
 0x14c   :  { %p1948_p6 = pnand %p1947_p5, %p1941_p2 }
 0x14e   :  { %1951 = shalt.err (!%p1948_p6)
}
 0x14f   :  { %s2160_s21 = smov [#allocation29]  }
 0x150   :  { %280 = dma.vmem_to_smem %s278_s28, 16, %s2160_s21, [#allocation5]  }
 0x151   :  { %2084 = dma.done.wait [#allocation3], 32  }
 0x152   :  { %2085 = vsyncadd [#allocation3], 4294967264 }
 0x153   :  { %2086 = dma.done.wait [#allocation7], 288  }
 0x154   :  { %2087 = vsyncadd [#allocation7], 4294967008 }
 0x155   :  { %2088 = dma.done.wait [#allocation10], 384  }
 0x156   :  { %2089 = vsyncadd [#allocation10], 4294966912 }
 0x157   :  { %2090 = dma.done.wait [#allocation13], 160  }
 0x158   :  { %2091 = vsyncadd [#allocation13], 4294967136 }
 0x159   :  { %2092 = dma.done.wait [#allocation16], 64  }
 0x15a   :  { %2093 = vsyncadd [#allocation16], 4294967232 }
 0x15b   :  { %2094 = dma.done.wait [#allocation19], 64  }
 0x15c   :  { %2095 = vsyncadd [#allocation19], 4294967232 }
 0x15d   :  { %2096 = dma.done.wait [#allocation22], 48  }
 0x15e   :  { %2097 = vsyncadd [#allocation22], 4294967248 }
 0x15f   :  { %2098 = dma.done.wait [#allocation25], 512  }
 0x160   :  { %2099 = vsyncadd [#allocation25], 4294966784 }
 0x161   :  { %2100 = dma.done.wait [#allocation28], 256  }
 0x162   :  { %2101 = vsyncadd [#allocation28], 4294967040 }
 0x163   :  { %2102 = dma.done.wait [#allocation5], 16  }
 0x164   :  { %2103 = vsyncadd [#allocation5], 4294967280 }
 0x165   :  { %332 = sfence }
 0x166   :  { %s2626_s9 = sld [smem:[#allocation54_spill]]  ;;  %s2627_s10 = sld [smem:[#allocation53_spill]]  ;;  %v2161_v1 = vmov 0.0   ;;  %vm2162_vm0 = vmmov 0   ;;  %v334_v5 = vld [vmem:[#allocation2] sm:$0x3]  ;;  %v640_v52 = vlaneseq }
 0x167   :  { %1411 = vmatprep.subr.bf16.mxu0 %v2161_v1  ;;  %1419 = vmatprep.subr.bf16.mxu1 %v2161_v1  ;;  %s2628_s14 = sld [smem:[#allocation55_spill]]  ;;  %v335_v6 = vld [vmem:[#allocation6] sm:$0x3]  ;;  %v345_v7 = vpack.c.bf16 %v334_v5, %v334_v5  ;;  %vm362_vm1 = vcmask 261120   ;;  %v336_v11 = vld [vmem:[#allocation17] sm:$0x3] }
 0x168   :  { %1415 = vmatprep.mubr.msk.bf16.mxu0 %vm2162_vm0, %v2161_v1  ;;  %1423 = vmatprep.mubr.msk.bf16.mxu1 %vm2162_vm0, %v2161_v1  ;;  %v340_v8 = vpack.c.bf16 %v335_v6, %v335_v6  ;;  %v461_v12 = vpack.c.bf16 %v336_v11, %v336_v11  ;;  %v1344_v23 = vld [vmem:[#allocation23] ss:$0 sm:$0xff]  ;;  %v337_v30 = vld [vmem:[#allocation18] sm:$0x3]  ;;  %s2163_s11 = smov 32   ;;  %s2629_s24 = sld [smem:[#allocation56_spill]] }
 0x169   :  { %v1536_v41 = vld [vmem:[#allocation27] sm:$0xff]   ;;  %v1538_v43 = vld [vmem:[#allocation27 + $0x8] sm:$0xff]   ;;  %s2630_s29 = sld [smem:[#allocation60_spill]]  ;;  %v2164_v50 = vmov 1966171168   ;;  %v2470_v54 = vshrl.u32 %v640_v52, 7 }
 0x16a   :  { %v638_v51 = vunpack.c.l.s4 %v2164_v50  ;;  %v1365_v62 = vld [vmem:[#allocation9] sm:$0xff]   ;;  %v1388_v6 = vld [vmem:[#allocation9 + $0x8] sm:$0xff]   ;;  %s2631_s17 = sld [smem:[#allocation61_spill]]  ;;  %s2165_s15 = smov 96   ;;  %vm721_vm2 = vcmask 130112   ;;  %vm732_vm3 = vcmask 1041409  }
 0x16b   :  { %v1370_v11 = vunpack.c.l.bf16 %v1388_v6  ;;  %s700_s8 = sld [smem:[#allocation29]]  ;;  %s2632_s0 = sld [smem:[#allocation62_spill]]  ;;  %vm735_vm4 = vcmask 123904   ;;  %vm919_vm6 = vcmask 58368   ;;  %vm1191_vm8 = vcmask 254976  }
 0x16c   :  { %v1530_v0 = vld [vmem:[%s2626_s9] sm:$0xff]   ;;  %v1532_v3 = vld [vmem:[%s2626_s9 + $0x8] sm:$0xff]   ;;  %v639_v53 = vunpack.c.0.s8 %v638_v51  ;;  %s1352_s16 = sld [smem:[#allocation29 + $0x1]]  ;;  %s2633_s18 = sld [smem:[#allocation58_spill]] }
 0x16d   :  { %v1531_v2 = vld [vmem:[%s2627_s10] sm:$0xff]   ;;  %1412 = vmatpush3.bf16.msra.mxu0 %v1530_v0  ;;  %v1533_v4 = vld [vmem:[%s2627_s10 + $0x8] sm:$0xff]   ;;  %s2167_s27 = smov [#allocation31]  }
 0x16e   :  { %1420 = vmatpush3.bf16.msra.mxu1 %v1531_v2  ;;  %1413 = vmatprep.subr.bf16.mxu0 %v2161_v1  ;;  %v1534_v9 = vld [vmem:[%s2628_s14] sm:$0xff]   ;;  %v1535_v10 = vld [vmem:[%s2628_s14 + $0x8] sm:$0xff]   ;;  %v642_v56 = vsub.s32 %v639_v53, %v2470_v54  ;;  %s1229_s22 = sshll.u32 %s2167_s27, 4  ;;  %s1230_s22 = int_to_ptr.vmem [resolvable:$true] %s1229_s22 }
 0x16f   :  { %1421 = vmatprep.subr.bf16.mxu1 %v2161_v1  ;;  %v1537_v42 = vld [vmem:[%s2629_s24] sm:$0xff]   ;;  %v1539_v44 = vld [vmem:[%s2629_s24 + $0x8] sm:$0xff]   ;;  %s1952_s19 = scalar_lea.vmem %s1230_s22, 32  ;;  %p1957_p8 = scmp.lt.s32.totalorder %s1230_s22, %s1230_s22 }
 0x170   :  { %v1346_v55 = vld [vmem:[%s2630_s29] ss:$0 sm:$0xff]  ;;  %p1953_p7 = scmp.ne.s32.totalorder %s1230_s22, %s1952_s19  ;;  %p1958_p9 = scmp.lt.s32.totalorder %s1952_s19, %s1952_s19 }
 0x171   :  { %1414 = vmatpush3.bf16.msra.mxu0 %v1532_v3  ;;  %v2480_v3 = vsub.s32 0, %v2470_v54 }
 0x172   :  { %1422 = vmatpush3.bf16.msra.mxu1 %v1533_v4  ;;  %1427 = vmatprep.subr.bf16.mxu0 %v2161_v1  ;;  %p1959_p10 = por %p1958_p9, %p1957_p8 }
 0x173   :  { %1435 = vmatprep.subr.bf16.mxu1 %v2161_v1 }
 0x174   :  { %1416 = vmatmul.mubr.msk.bf16.vlgmr.msra.gmra.mrb[0].mxu0 %vm362_vm1, %v345_v7  ;;  %v1366_v7 = vunpack.c.l.bf16 %v1365_v62  ;;  %p1960_p11 = pnand %p1959_p10, %p1953_p7 }
 0x175   :  { %1424 = vmatmul.mubr.msk.bf16.vlgmr.msra.gmra.mrb[0].mxu1 %vm362_vm1, %v340_v8  ;;  %1428 = vmatpush3.bf16.msra.mxu0 %v1534_v9  ;;  %v1367_v8 = vunpack.c.h.bf16 %v1365_v62 }
 0x176   :  { %1429 = vmatprep.subr.bf16.mxu0 %v2161_v1  ;;  %1431 = vmatprep.mubr.msk.bf16.mxu0 %vm2162_vm0, %v2161_v1 }
 0x177   :  { %1439 = vmatprep.mubr.msk.bf16.mxu1 %vm2162_vm0, %v2161_v1  ;;  %1436 = vmatpush3.bf16.msra.mxu1 %v1536_v41 }
 0x178   :  { %1437 = vmatprep.subr.bf16.mxu1 %v2161_v1 }
 0x179   :  { %1430 = vmatpush3.bf16.msra.mxu0 %v1535_v10 }
 0x17a   :  { %1443 = vmatprep.subr.bf16.mxu0 %v2161_v1 }
 0x17b   :  { %1438 = vmatpush3.bf16.msra.mxu1 %v1538_v43  ;;  %v1381_v43 = vld [vmem:[#allocation12] sm:$0xff]  }
 0x17c   :  { %1432 = vmatmul.mubr.msk.bf16.vlgmr.msra.gmra.mrb[4].mxu0 %vm362_vm1, %v461_v12  ;;  %1451 = vmatprep.subr.bf16.mxu1 %v2161_v1  ;;  %v1371_v12 = vunpack.c.h.bf16 %v1388_v6 }
 0x17d   :  { %1447 = vmatprep.mubr.msk.bf16.mxu0 %vm2162_vm0, %v2161_v1  ;;  %1444 = vmatpush3.bf16.msra.mxu0 %v1537_v42 }
 0x17e   :  { %1445 = vmatprep.subr.bf16.mxu0 %v2161_v1 }
 0x181   :  { %1446 = vmatpush3.bf16.msra.mxu0 %v1539_v44 }
 0x182   :  { %1459 = vmatprep.subr.bf16.mxu0 %v2161_v1 }
 0x247   :  { %v400_v13 = vpop.f32.mrb[0].mxu0 }
 0x248   :  { %v1417_v14 = vpop.f32.mrb[1].mxu0  ;;  %v455_v15 = vpop.f32.mrb[0].mxu1 }
 0x249   :  { %v456_v16 = vadd.f32 %v455_v15, %v400_v13  ;;  %v403_v17 = vpop.f32.mrb[2].mxu0  ;;  %v1425_v18 = vpop.f32.mrb[1].mxu1 }
 0x24a   :  { %v1418_v19 = vpop.f32.mrb[3].mxu0  ;;  %v458_v20 = vpop.f32.mrb[2].mxu1 }
 0x24b   :  { %v1426_v21 = vpop.f32.mrb[3].mxu1  ;;  %v1350_v20 = vld [vmem:[%s2631_s17] ss:$0 sm:$0xff] }
 0x24f   :  { %v515_v22 = vpop.f32.mrb[4].mxu0 }
 0x250   :  { %v521_v24 = vadd.f32 %v515_v22, %v456_v16  ;;  %v1433_v25 = vpop.f32.mrb[5].mxu0 }
 0x251   :  { %v518_v26 = vpop.f32.mrb[6].mxu0 }
 0x252   :  { %v529_v27 = vadd.f32 %v1344_v23, %v521_v24  ;;  %v1434_v28 = vpop.f32.mrb[7].mxu0 }
 0x254   :  { %1544 = vtanh.f32 %v529_v27  ;;  %v1345_v31 = vmul.f32 -1.442695, %v529_v27 }
 0x256   :  { %1546 = vpow2.f32 %v1345_v31 }
 0x25e   :  { %v1545_v29 = vpop.eup %1544 }
 0x25f   :  { %543 = vrot.lane.b32.xlu0 %v1545_v29, %s2145_s7 }
 0x260   :  { %v1547_v32 = vpop.eup %1546 }
 0x261   :  { %v533_v33 = vadd.f32 1.0, %v1547_v32 }
 0x263   :  { %538 = vrot.lane.b32.xlu0 %v337_v30, %s2163_s11  ;;  %1548 = vrcp.f32 %v533_v33  ;;  %v711_v33 = vand.u32 127, %v640_v52  ;;  %v1382_v52 = vunpack.c.l.bf16 %v1381_v43 }
 0x26d   :  { %v1549_v34 = vpop.eup %1548 }
 0x2d1   :  { %v544_v35 = vpop.permute.xlu0 %543 }
 0x2d2   :  { %v546_v36 = vmul.f32 %v1549_v34, %v544_v35  ;;  %v701_v35 = vstv %s700_s8 }
 0x2d4   :  { %548 = vrot.lane.b32.xlu1 %v546_v36, %s2163_s11 }
 0x2d5   :  { %v539_v37 = vpop.permute.xlu0 %538 }
 0x2d6   :  { %v541_v38 = vmul.f32 %v1549_v34, %v539_v37 }
 0x346   :  { %v549_v39 = vpop.permute.xlu1 %548 }
 0x347   :  { %v2449_v40 = vadd.f32 %v549_v39, %v541_v38  ;;  %v2492_v38 = vsub.s32 %v711_v33, %v2470_v54 }
 0x349   :  { %1550 = vtanh.f32 %v2449_v40 }
 0x353   :  { %v1551_v45 = vpop.eup %1550 }
 0x354   :  { %554 = vrot.lane.b32.xlu1 %v1551_v45, %s2145_s7 }
 0x3c6   :  { %v555_v46 = vpop.permute.xlu1 %554 }
 0x3c7   :  { %v2459_v47 = vmul.f32 %v1549_v34, %v555_v46  ;;  %v716_v34 = vadd.s32 4294967288, %v711_v33 }
 0x3c9   :  { %v558_v48 = vpack.c.bf16 %v2459_v47, %v2459_v47  ;;  %v2495_v39 = vsub.s32 %v716_v34, %v2470_v54 }
 0x3cb   :  { %571 = vrot.lane.b32.xlu0 %v558_v48, %s2163_s11  ;;  %v1383_v48 = vunpack.c.h.bf16 %v1381_v43 }
 0x43d   :  { %v572_v49 = vpop.permute.xlu0 %571 }
 0x43e   :  { %1440 = vmatmul.mubr.msk.bf16.vlgmr.msra.gmra.mrb[4].mxu1 %vm362_vm1, %v572_v49  ;;  %1448 = vmatmul.mubr.msk.bf16.vlgmr.msra.gmra.mrb[8].mxu0 %vm362_vm1, %v572_v49 }
 0x43f   :  { %1455 = vmatprep.mubr.msk.bf16.mxu1 %vm2162_vm0, %v2161_v1  ;;  %1463 = vmatprep.mubr.msk.bf16.mxu0 %vm2162_vm0, %v2161_v1 }
 0x511   :  { %v622_v57 = vpop.f32.mrb[4].mxu1  ;;  %v2474_v58 = vpop.f32.mrb[8].mxu0 }
 0x512   :  { %v2476_v59 = vadd.f32 %v1346_v55, %v622_v57  ;;  %v1441_v60 = vpop.f32.mrb[5].mxu1  ;;  %v1449_v61 = vpop.f32.mrb[9].mxu0 }
 0x513   :  { %v625_v63 = vpop.f32.mrb[6].mxu1  ;;  %v1026_v0 = vpop.f32.mrb[10].mxu0 }
 0x514   :  { %v643_v2 = vrot.slane %v2476_v59, %v642_v56  ;;  %v1442_v4 = vpop.f32.mrb[7].mxu1  ;;  %v1450_v5 = vpop.f32.mrb[11].mxu0 }
 0x515   :  { %v1351_v4 = vld [vmem:[%s2632_s0] ss:$0 sm:$0xff] }
 0x516   :  { %v644_v9 = vcombine.high %v643_v2, %v643_v2  ;;  %v651_v10 = vrot.slane %v643_v2, %v642_v56 }
 0x518   :  { %v658_v13 = vrot.slane %v644_v9, %v642_v56  ;;  %v662_v14 = vrot.slane %v651_v10, %v2480_v3 }
 0x51a   :  { %v666_v15 = vrot.slane %v658_v13, %v2480_v3  ;;  %v669_v16 = vadd.f32 %v1366_v7, %v662_v14  ;;  %v670_v17 = vadd.f32 %v1367_v8, %v662_v14 }
 0x51c   :  { %v671_v18 = vadd.f32 %v1370_v11, %v666_v15  ;;  %v672_v19 = vadd.f32 %v1371_v12, %v666_v15  ;;  %1552 = vtanh.f32 %v669_v16  ;;  %v2166_v11 = vmov 0  }
 0x51d   :  { %1554 = vtanh.f32 %v670_v17  ;;  %1528 = vset.pattern.permute.xlu0 %v2166_v11  ;;  %1529 = vset.pattern.permute.xlu1 %v2166_v11  ;;  %v898_v16 = vstv %s1352_s16 }
 0x51e   :  { %1556 = vtanh.f32 %v672_v19 }
 0x51f   :  { %1558 = vtanh.f32 %v671_v18 }
 0x526   :  { %v1553_v21 = vpop.eup %1552 }
 0x527   :  { %v1555_v22 = vpop.eup %1554  ;;  %v684_v23 = vmul.f32 %v1553_v21, %v1350_v20  ;;  %v901_v21 = vld [vmem:[#allocation14] sm:$0x3] }
 0x528   :  { %v1557_v24 = vpop.eup %1556  ;;  %v685_v25 = vmul.f32 %v1555_v22, %v1350_v20  ;;  %vm902_vm5 = vcmp.gt.f32.partialorder %v901_v21, 0.5 }
 0x529   :  { %v1559_v26 = vpop.eup %1558  ;;  %v688_v27 = vsel %vm362_vm1, %v684_v23, 0.0  ;;  %v687_v28 = vmul.f32 %v1557_v24, %v1350_v20  ;;  %v916_v23 = vld [vmem:[#allocation15] sm:$0x3]  ;;  %v2522_v24 = vsub.s32 1, %v2470_v54 }
 0x52a   :  { %v691_v29 = vsel %vm362_vm1, %v685_v25, 0.0  ;;  %689 = vadd.xlane.f32.xlu1 %v688_v27  ;;  %v686_v30 = vmul.f32 %v1559_v26, %v1350_v20  ;;  %vm917_vm7 = vcmp.gt.f32.partialorder %v916_v23, 0.5 }
 0x52b   :  { %692 = vadd.xlane.f32.xlu0 %v691_v29  ;;  %v697_v31 = vsel %vm362_vm1, %v687_v28, 0.0 }
 0x52c   :  { %v694_v32 = vsel %vm362_vm1, %v686_v30, 0.0 }
 0x52e   :  { %698 = vadd.xlane.f32.xlu1 %v697_v31 }
 0x52f   :  { %695 = vadd.xlane.f32.xlu0 %v694_v32 }
 0x53f   :  { %874 = vrot.lane.b32.xlu1 %v666_v15, %s2165_s15 }
 0x545   :  { %872 = vrot.lane.b32.xlu0 %v662_v14, %s2165_s15 }
 0x5b7   :  { %v690_v36 = vpop.xlane.xlu1 %689 }
 0x5b8   :  { %v693_v37 = vpop.xlane.xlu0 %692  ;;  %v702_v42 = vadd.f32 %v701_v35, %v690_v36 }
 0x5b9   :  { %v2497_v41 = vadd.f32 %v701_v35, %v693_v37 }
 0x5ba   :  { %v715_v50 = vrot.slane %v702_v42, %v2492_v38 }
 0x5bb   :  { %v699_v44 = vpop.xlane.xlu1 %698  ;;  %v720_v49 = vrot.slane %v2497_v41, %v2495_v39 }
 0x5bc   :  { %v2499_v45 = vadd.f32 %v701_v35, %v699_v44  ;;  %v696_v46 = vpop.xlane.xlu0 %695 }
 0x5bd   :  { %v2504_v51 = vadd.f32 %v701_v35, %v696_v46  ;;  %v722_v62 = vsel %vm721_vm2, %v720_v49, %v715_v50 }
 0x5be   :  { %v730_v53 = vrot.slane %v2499_v45, %v2495_v39 }
 0x5bf   :  { %v726_v55 = vrot.slane %v2504_v51, %v2492_v38  ;;  %v875_v56 = vpop.permute.xlu1 %874 }
 0x5c0   :  { %v879_v57 = vadd.f32 %v1383_v48, %v875_v56  ;;  %v873_v60 = vpop.permute.xlu0 %872 }
 0x5c1   :  { %v878_v61 = vadd.f32 %v1382_v52, %v873_v60  ;;  %v731_v63 = vsel %vm721_vm2, %v730_v53, %v726_v55 }
 0x5c2   :  { %1560 = vtanh.f32 %v879_v57  ;;  %v733_v0 = vsel %vm732_vm3, %v731_v63, %v722_v62 }
 0x5c3   :  { %1562 = vtanh.f32 %v878_v61  ;;  %v736_v2 = vsel %vm735_vm4, %v733_v0, -inf }
 0x5c4   :  { %737 = vmax.xlane.f32.xlu1 %v736_v2 }
 0x5cc   :  { %v1561_v5 = vpop.eup %1560 }
 0x5cd   :  { %v1563_v6 = vpop.eup %1562  ;;  %v890_v9 = vmul.f32 %v1561_v5, %v1351_v4 }
 0x5ce   :  { %v889_v7 = vmul.f32 %v1563_v6, %v1351_v4 }
 0x5cf   :  { %v894_v10 = vsel %vm362_vm1, %v890_v9, 0.0 }
 0x5d0   :  { %v891_v8 = vsel %vm362_vm1, %v889_v7, 0.0 }
 0x5d1   :  { %892 = vadd.xlane.f32.xlu0 %v891_v8 }
 0x5d5   :  { %895 = vadd.xlane.f32.xlu0 %v894_v10 }
 0x651   :  { %v738_v12 = vpop.xlane.xlu1 %737 }
 0x652   :  { %v743_v13 = vrot.slane %v738_v12, %v2480_v3  ;;  %v747_v28 = vrot.slane %v738_v12, %v2522_v24 }
 0x654   :  { %v750_v14 = vsub.f32 %v702_v42, %v743_v13  ;;  %v751_v29 = vsub.f32 %v2497_v41, %v743_v13  ;;  %v752_v54 = vsub.f32 %v2504_v51, %v747_v28  ;;  %v753_v34 = vsub.f32 %v2499_v45, %v747_v28 }
 0x656   :  { %v754_v15 = vmul.f32 1.442695, %v750_v14  ;;  %v756_v33 = vmul.f32 1.442695, %v751_v29  ;;  %v758_v35 = vmul.f32 1.442695, %v752_v54 }
 0x657   :  { %v760_v36 = vmul.f32 1.442695, %v753_v34  ;;  %v1541_v14 = vld [vmem:[#allocation26] sm:$0xff]  }
 0x658   :  { %1564 = vpow2.f32 %v754_v15  ;;  %v1540_v15 = vld [vmem:[#allocation24] sm:$0xff]   ;;  %1460 = vmatpush3.bf16.msra.mxu0 %v1541_v14 }
 0x659   :  { %1566 = vpow2.f32 %v756_v33  ;;  %1452 = vmatpush3.bf16.msra.mxu1 %v1540_v15  ;;  %1461 = vmatprep.subr.bf16.mxu0 %v2161_v1  ;;  %v1385_v33 = vld [vmem:[#allocation11] sm:$0xff]  }
 0x65a   :  { %1568 = vpow2.f32 %v758_v35  ;;  %1453 = vmatprep.subr.bf16.mxu1 %v2161_v1 }
 0x65b   :  { %1570 = vpow2.f32 %v760_v36 }
 0x65e   :  { %v893_v17 = vpop.xlane.xlu0 %892 }
 0x65f   :  { %v899_v18 = vadd.f32 %v898_v16, %v893_v17  ;;  %v1542_v17 = vld [vmem:[#allocation24 + $0x8] sm:$0xff]  }
 0x660   :  { %1454 = vmatpush3.bf16.msra.mxu1 %v1542_v17 }
 0x661   :  { %v908_v25 = vrot.slane %v899_v18, %v2492_v38  ;;  %v338_v18 = vld [vmem:[#allocation20] sm:$0x3] }
 0x662   :  { %v2518_v19 = vpop.eup %1564  ;;  %v896_v20 = vpop.xlane.xlu0 %895 }
 0x663   :  { %v900_v22 = vadd.f32 %v898_v16, %v896_v20  ;;  %767 = vperm.xlu0 %1528, %v2518_v19   ;;  %v1567_v37 = vpop.eup %1566  ;;  %v1543_v16 = vld [vmem:[#allocation26 + $0x8] sm:$0xff]  }
 0x664   :  { %v1569_v41 = vpop.eup %1568  ;;  %1462 = vmatpush3.bf16.msra.mxu0 %v1543_v16  ;;  %v339_v20 = vld [vmem:[#allocation21] sm:$0x3] }
 0x665   :  { %v912_v26 = vrot.slane %v900_v22, %v2492_v38  ;;  %v1571_v42 = vpop.eup %1570 }
 0x667   :  { %v913_v27 = vsel %vm732_vm3, %v912_v26, %v908_v25  ;;  %v1389_v25 = vld [vmem:[#allocation8 + $0x8] sm:$0xff]  }
 0x668   :  { %v915_v30 = vsel %vm902_vm5, -1e+08, %v913_v27  ;;  %v1378_v29 = vunpack.c.l.bf16 %v1389_v25 }
 0x669   :  { %v920_v31 = vsel %vm919_vm6, %v915_v30, -inf  ;;  %v918_v32 = vsel %vm917_vm7, -1e+08, %v915_v30 }
 0x66a   :  { %921 = vmax.xlane.f32.xlu1 %v920_v31  ;;  %1208 = vst.msk [vmem:[#allocation36] sm:$0x3] %vm919_vm6, %v918_v32  ;;  %v1379_v32 = vunpack.c.h.bf16 %v1389_v25 }
 0x67b   :  { %770 = vperm.xlu1 %1529, %v1567_v37  }
 0x67f   :  { %773 = vperm.xlu1 %1529, %v1569_v41  }
 0x683   :  { %776 = vperm.xlu1 %1529, %v1571_v42  }
 0x6e2   :  { %v768_v50 = vpop.permute.xlu0 %767 }
 0x6e3   :  { %v781_v52 = vrot.slane %v768_v50, %v2492_v38 }
 0x6f7   :  { %v922_v43 = vpop.xlane.xlu1 %921 }
 0x6f8   :  { %v923_v44 = vsub.f32 %v915_v30, %v922_v43 }
 0x6fa   :  { %v924_v46 = vmul.f32 1.442695, %v923_v44 }
 0x6fb   :  { %v771_v48 = vpop.permute.xlu1 %770 }
 0x6fc   :  { %1572 = vpow2.f32 %v924_v46  ;;  %v785_v45 = vrot.slane %v771_v48, %v2495_v39 }
 0x6fe   :  { %v786_v57 = vsel %vm721_vm2, %v785_v45, %v781_v52 }
 0x6ff   :  { %v774_v49 = vpop.permute.xlu1 %773 }
 0x700   :  { %v790_v53 = vrot.slane %v774_v49, %v2492_v38  ;;  %v1387_v49 = vunpack.c.h.bf16 %v1385_v33 }
 0x703   :  { %v777_v51 = vpop.permute.xlu1 %776 }
 0x704   :  { %v794_v55 = vrot.slane %v777_v51, %v2495_v39 }
 0x706   :  { %v1573_v56 = vpop.eup %1572  ;;  %v795_v60 = vsel %vm721_vm2, %v794_v55, %v790_v53 }
 0x707   :  { %v926_v61 = vsel %vm919_vm6, %v1573_v56, 0.0  ;;  %v796_v62 = vsel %vm732_vm3, %v795_v60, %v786_v57 }
 0x708   :  { %927 = vadd.xlane.f32.xlu0 %v926_v61  ;;  %v798_v63 = vsel %vm735_vm4, %v796_v62, 0.0 }
 0x709   :  { %799 = vadd.xlane.f32.xlu1 %v798_v63 }
 0x795   :  { %v928_v39 = vpop.xlane.xlu0 %927 }
 0x796   :  { %v800_v0 = vpop.xlane.xlu1 %799 }
 0x797   :  { %v805_v2 = vrot.slane %v800_v0, %v2480_v3  ;;  %v809_v38 = vrot.slane %v800_v0, %v2522_v24 }
 0x799   :  { %1574 = vrcp.f32 %v805_v2 }
 0x79a   :  { %1576 = vrcp.f32 %v809_v38 }
 0x79b   :  { %1578 = vrcp.f32 %v928_v39 }
 0x7a3   :  { %v1575_v4 = vpop.eup %1574 }
 0x7a4   :  { %v814_v5 = vmul.f32 %v1575_v4, %v1567_v37  ;;  %v813_v6 = vmul.f32 %v1575_v4, %v2518_v19  ;;  %v1577_v7 = vpop.eup %1576  ;;  %v1090_v19 = vpack.c.bf16 %v338_v18, %v338_v18  ;;  %v1386_v37 = vunpack.c.l.bf16 %v1385_v33 }
 0x7a5   :  { %v816_v8 = vmul.f32 %v1577_v7, %v1569_v41  ;;  %v1579_v9 = vpop.eup %1578  ;;  %v817_v10 = vmul.f32 %v1577_v7, %v1571_v42 }
 0x7a6   :  { %833 = vperm.xlu0 %1528, %v814_v5   ;;  %828 = vperm.xlu1 %1529, %v813_v6   ;;  %v930_v11 = vmul.f32 %v1579_v9, %v1573_v56 }
 0x7a7   :  { %1464 = vmatmul.mubr.msk.bf16.vlgmr.msra.gmra.mrb[12].mxu0 %vm362_vm1, %v1090_v19 }
 0x7a8   :  { %v934_v12 = vrot.slane %v930_v11, %v2480_v3  ;;  %v941_v13 = vrot.slane %v930_v11, %v2522_v24  ;;  %v1373_v3 = vld [vmem:[#allocation8] sm:$0xff]  }
 0x7a9   :  { %v1374_v21 = vunpack.c.l.bf16 %v1373_v3  ;;  %v1375_v22 = vunpack.c.h.bf16 %v1373_v3 }
 0x7aa   :  { %838 = vperm.xlu1 %1529, %v816_v8   ;;  %1167 = vrot.lane.b32.xlu0 %v339_v20, %s2163_s11 }
 0x7ae   :  { %843 = vperm.xlu1 %1529, %v817_v10  }
 0x7b2   :  { %936 = vbcast.lane.b32.xlu1 %v934_v12, 256 }
 0x7b6   :  { %943 = vbcast.lane.b32.xlu1 %v941_v13, 256 }
 0x825   :  { %v829_v23 = vpop.permute.xlu1 %828  ;;  %v834_v24 = vpop.permute.xlu0 %833 }
 0x826   :  { %v846_v26 = vmul.f32 %v1374_v21, %v829_v23  ;;  %v847_v27 = vmul.f32 %v1375_v22, %v834_v24 }
 0x828   :  { %v850_v28 = vsel %vm362_vm1, %v846_v26, 0.0  ;;  %v851_v1 = vsel %vm362_vm1, %v847_v27, 0.0 }
 0x829   :  { %v852_v30 = vadd.f32 %v851_v1, %v850_v28  ;;  %v839_v31 = vpop.permute.xlu1 %838  ;;  %v1362_v28 = vld [vmem:[%s2633_s18] ss:$0 sm:$0xff] }
 0x82a   :  { %v848_v34 = vmul.f32 %v1378_v29, %v839_v31 }
 0x82b   :  { %v853_v54 = vrot.slane %v852_v30, 4 }
 0x82c   :  { %v859_v42 = vsel %vm362_vm1, %v848_v34, 0.0 }
 0x82d   :  { %v844_v35 = vpop.permute.xlu1 %843  ;;  %v854_v41 = vadd.f32 %v853_v54, %v852_v30 }
 0x82e   :  { %v849_v36 = vmul.f32 %v1379_v32, %v844_v35 }
 0x82f   :  { %v855_v50 = vrot.slane %v854_v41, 2 }
 0x830   :  { %v860_v43 = vsel %vm362_vm1, %v849_v36, 0.0 }
 0x831   :  { %v861_v44 = vadd.f32 %v860_v43, %v859_v42  ;;  %v937_v46 = vpop.permute.xlu1 %936  ;;  %v856_v57 = vadd.f32 %v855_v50, %v854_v41 }
 0x832   :  { %v949_v48 = vmul.f32 %v1386_v37, %v937_v46 }
 0x833   :  { %v862_v45 = vrot.slane %v861_v44, 4  ;;  %v857_v2 = vrot.slane %v856_v57, 1 }
 0x834   :  { %v951_v51 = vsel %vm362_vm1, %v949_v48, 0.0 }
 0x835   :  { %v863_v52 = vadd.f32 %v862_v45, %v861_v44  ;;  %v952_v53 = vrot.slane %v951_v51, 4  ;;  %v944_v55 = vpop.permute.xlu1 %943  ;;  %v858_v7 = vadd.f32 %v857_v2, %v856_v57 }
 0x836   :  { %v950_v56 = vmul.f32 %v1387_v49, %v944_v55 }
 0x837   :  { %v864_v60 = vrot.slane %v863_v52, 2  ;;  %v953_v61 = vadd.f32 %v952_v53, %v951_v51 }
 0x838   :  { %v958_v62 = vsel %vm362_vm1, %v950_v56, 0.0 }
 0x839   :  { %v954_v63 = vrot.slane %v953_v61, 2  ;;  %v959_v0 = vrot.slane %v958_v62, 4  ;;  %v865_v38 = vadd.f32 %v864_v60, %v863_v52 }
 0x83b   :  { %v955_v39 = vadd.f32 %v954_v63, %v953_v61  ;;  %v960_v4 = vadd.f32 %v959_v0, %v958_v62  ;;  %v866_v8 = vrot.slane %v865_v38, 1 }
 0x83d   :  { %v956_v5 = vrot.slane %v955_v39, 1  ;;  %v961_v6 = vrot.slane %v960_v4, 2  ;;  %v867_v13 = vadd.f32 %v866_v8, %v865_v38 }
 0x83f   :  { %v957_v9 = vadd.f32 %v956_v5, %v955_v39  ;;  %v962_v10 = vadd.f32 %v961_v6, %v960_v4 }
 0x841   :  { %v965_v11 = vadd.f32 %v957_v9, %v858_v7  ;;  %v963_v12 = vrot.slane %v962_v10, 1 }
 0x843   :  { %v964_v14 = vadd.f32 %v963_v12, %v962_v10  ;;  %v967_v15 = vpack.c.bf16 %v965_v11, %v965_v11 }
 0x845   :  { %v966_v16 = vadd.f32 %v964_v14, %v867_v13  ;;  %v1031_v18 = vunpack.c.l.b16 %v967_v15 }
 0x847   :  { %v968_v17 = vpack.c.bf16 %v966_v16, %v966_v16 }
 0x849   :  { %v1032_v19 = vunpack.c.l.b16 %v968_v17 }
 0x84b   :  { %v1033_v20 = vsel %vm732_vm3, %v1032_v19, %v1031_v18 }
 0x84c   :  { %v1034_v3 = vpack.c.b16 %v1033_v20, %v1033_v20 }
 0x84e   :  { %1456 = vmatmul.mubr.msk.bf16.vlgmr.msra.gmra.mrb[8].mxu1 %vm362_vm1, %v1034_v3 }
 0x87a   :  { %v1144_v21 = vpop.f32.mrb[12].mxu0 }
 0x87b   :  { %v1465_v22 = vpop.f32.mrb[13].mxu0 }
 0x87c   :  { %v1147_v23 = vpop.f32.mrb[14].mxu0 }
 0x87d   :  { %v1466_v24 = vpop.f32.mrb[15].mxu0 }
 0x921   :  { %v1084_v25 = vpop.f32.mrb[8].mxu1 }
 0x922   :  { %v1085_v26 = vadd.f32 %v1084_v25, %v2474_v58  ;;  %v1457_v27 = vpop.f32.mrb[9].mxu1  ;;  %v1168_v58 = vpop.permute.xlu0 %1167 }
 0x923   :  { %v1087_v1 = vpop.f32.mrb[10].mxu1 }
 0x924   :  { %v1150_v29 = vadd.f32 %v1144_v21, %v1085_v26  ;;  %v1458_v30 = vpop.f32.mrb[11].mxu1 }
 0x926   :  { %v1158_v31 = vadd.f32 %v1362_v28, %v1150_v29 }
 0x928   :  { %1580 = vtanh.f32 %v1158_v31  ;;  %v1363_v54 = vmul.f32 -1.442695, %v1158_v31 }
 0x92a   :  { %1582 = vpow2.f32 %v1363_v54 }
 0x932   :  { %v1581_v32 = vpop.eup %1580 }
 0x933   :  { %1172 = vrot.lane.b32.xlu1 %v1581_v32, %s2145_s7 }
 0x934   :  { %v1583_v33 = vpop.eup %1582 }
 0x935   :  { %v1162_v34 = vadd.f32 1.0, %v1583_v33 }
 0x937   :  { %1584 = vrcp.f32 %v1162_v34 }
 0x941   :  { %v1585_v35 = vpop.eup %1584 }
 0x942   :  { %v1170_v41 = vmul.f32 %v1585_v35, %v1168_v58 }
 0x9a5   :  { %v1173_v36 = vpop.permute.xlu1 %1172 }
 0x9a6   :  { %v1175_v37 = vmul.f32 %v1585_v35, %v1173_v36 }
 0x9a8   :  { %1177 = vrot.lane.b32.xlu1 %v1175_v37, %s2163_s11 }
 0x9ac   :  { %1194 = vrot.lane.b32.xlu1 %v2449_v40, %s2165_s15 }
 0x9b0   :  { %1188 = vrot.lane.b32.xlu1 %v2459_v47, %s2163_s11 }
 0x9b4   :  { %1209 = vrot.lane.b32.xlu1 %v2476_v59, %s2165_s15 }
 0xa1a   :  { %v1178_v42 = vpop.permute.xlu1 %1177 }
 0xa1b   :  { %v1180_v43 = vadd.f32 %v1178_v42, %v1170_v41 }
 0xa1d   :  { %1586 = vtanh.f32 %v1180_v43 }
 0xa1e   :  { %v1195_v44 = vpop.permute.xlu1 %1194 }
 0xa1f   :  { %1197 = vst.msk [vmem:[#allocation31] sm:$0x3] %vm1191_vm8, %v1195_v44 }
 0xa22   :  { %v1189_v46 = vpop.permute.xlu1 %1188 }
 0xa23   :  { %1192 = vst.msk [vmem:[#allocation30] sm:$0x3] %vm1191_vm8, %v1189_v46 }
 0xa26   :  { %v1210_v48 = vpop.permute.xlu1 %1209 }
 0xa27   :  { %v1587_v40 = vpop.eup %1586  ;;  %1212 = vst.msk [vmem:[#allocation37] sm:$0x3] %vm1191_vm8, %v1210_v48 }
 0xa28   :  { %1183 = vrot.lane.b32.xlu0 %v1587_v40, %s2145_s7 }
 0xa2c   :  { %1204 = vrot.lane.b32.xlu0 %v1180_v43, %s2165_s15 }
 0xa2d   :  { %1963 = shalt.err (!%p1960_p11)
}
 0xa2e   :  { %s2634_s5 = sld [smem:[#allocation65_spill]] }
 0xa34   :  { %s1964_s25 = scalar_lea.hbm %s2634_s5, 32 }
 0xa35   :  { %p1965_p12 = scmp.ne.s32.totalorder %s2634_s5, %s1964_s25  ;;  %p1968_p13 = scmp.lt.u32.totalorder %s1964_s25, %s2634_s5 }
 0xa37   :  { %p1970_p0 = pnand %p1968_p13, %p1965_p12 }
 0xa39   :  { %1973 = shalt.err (!%p1970_p0)
}
 0xa3a   :  { %1232 = dma.vmem_to_hbm [thread:$0]  %s1230_s22, 32, %s2634_s5, [#allocation32]  }
 0xa3b   :  { %s2168_s7 = smov [#allocation30]  }
 0xa3c   :  { %s1219_s23 = sshll.u32 %s2168_s7, 4  ;;  %s1220_s23 = int_to_ptr.vmem [resolvable:$true] %s1219_s23 }
 0xa3d   :  { %s1974_s26 = scalar_lea.vmem %s1220_s23, 32  ;;  %p1979_p2 = scmp.lt.s32.totalorder %s1220_s23, %s1220_s23 }
 0xa3e   :  { %p1975_p1 = scmp.ne.s32.totalorder %s1220_s23, %s1974_s26  ;;  %p1980_p3 = scmp.lt.s32.totalorder %s1974_s26, %s1974_s26 }
 0xa40   :  { %p1981_p4 = por %p1980_p3, %p1979_p2 }
 0xa42   :  { %p1982_p5 = pnand %p1981_p4, %p1975_p1 }
 0xa44   :  { %1985 = shalt.err (!%p1982_p5)
}
 0xa45   :  { %s2635_s20 = sld [smem:[#allocation64_spill]] }
 0xa4b   :  { %s1986_s3 = scalar_lea.hbm %s2635_s20, 32 }
 0xa4c   :  { %p1987_p6 = scmp.ne.s32.totalorder %s2635_s20, %s1986_s3  ;;  %p1990_p7 = scmp.lt.u32.totalorder %s1986_s3, %s2635_s20 }
 0xa4e   :  { %p1992_p8 = pnand %p1990_p7, %p1987_p6 }
 0xa50   :  { %1995 = shalt.err (!%p1992_p8)
}
 0xa51   :  { %1222 = dma.vmem_to_hbm [thread:$0]  %s1220_s23, 32, %s2635_s20, [#allocation4]  }
 0xa52   :  { %s2169_s28 = smov [#allocation34]   ;;  %s2170_s1 = smov [#allocation37]  }
 0xa53   :  { %s1249_s13 = sshll.u32 %s2169_s28, 4  ;;  %s1269_s2 = sshll.u32 %s2170_s1, 4  ;;  %s1270_s2 = int_to_ptr.vmem [resolvable:$true] %s1269_s2  ;;  %s1250_s13 = int_to_ptr.vmem [resolvable:$true] %s1249_s13 }
 0xa54   :  { %s2171_s21 = smov [#allocation36]   ;;  %s1996_s10 = scalar_lea.vmem %s1270_s2, 32 }
 0xa55   :  { %s1259_s9 = sshll.u32 %s2171_s21, 4  ;;  %p1997_p9 = scmp.ne.s32.totalorder %s1270_s2, %s1996_s10  ;;  %s1260_s9 = int_to_ptr.vmem [resolvable:$true] %s1259_s9 }
 0xa56   :  { %p2001_p10 = scmp.lt.s32.totalorder %s1270_s2, %s1270_s2  ;;  %p2002_p11 = scmp.lt.s32.totalorder %s1996_s10, %s1996_s10 }
 0xa58   :  { %p2003_p12 = por %p2002_p11, %p2001_p10 }
 0xa5a   :  { %p2004_p13 = pnand %p2003_p12, %p1997_p9 }
 0xa9a   :  { %v1184_v47 = vpop.permute.xlu0 %1183 }
 0xa9b   :  { %v1186_v59 = vmul.f32 %v1585_v35, %v1184_v47 }
 0xa9c   :  { %2007 = shalt.err (!%p2004_p13)
}
 0xa9d   :  { %s2008_s14 = scalar_lea.hbm %s2331_s12, 32 }
 0xa9e   :  { %p2009_p0 = scmp.ne.s32.totalorder %s2331_s12, %s2008_s14  ;;  %p2012_p1 = scmp.lt.u32.totalorder %s2008_s14, %s2331_s12 }
 0xaa0   :  { %p2014_p2 = pnand %p2012_p1, %p2009_p0 }
 0xaa2   :  { %2017 = shalt.err (!%p2014_p2)
}
 0xaa3   :  { %1272 = dma.vmem_to_hbm [thread:$0]  %s1270_s2, 32, %s2331_s12, [#allocation38]   ;;  %1199 = vrot.lane.b32.xlu0 %v1186_v59, %s2163_s11  ;;  %v1205_v49 = vpop.permute.xlu0 %1204 }
 0xaa4   :  { %1207 = vst.msk [vmem:[#allocation34] sm:$0x3] %vm1191_vm8, %v1205_v49  ;;  %s2018_s24 = scalar_lea.vmem %s1250_s13, 32  ;;  %p2023_p4 = scmp.lt.s32.totalorder %s1250_s13, %s1250_s13 }
 0xaa5   :  { %p2019_p3 = scmp.ne.s32.totalorder %s1250_s13, %s2018_s24  ;;  %p2024_p5 = scmp.lt.s32.totalorder %s2018_s24, %s2018_s24 }
 0xaa7   :  { %p2025_p6 = por %p2024_p5, %p2023_p4 }
 0xaa9   :  { %p2026_p7 = pnand %p2025_p6, %p2019_p3 }
 0xaab   :  { %2029 = shalt.err (!%p2026_p7)
}
 0xaac   :  { %s2030_s29 = scalar_lea.hbm %s2321_s6, 32 }
 0xaad   :  { %p2031_p8 = scmp.ne.s32.totalorder %s2321_s6, %s2030_s29  ;;  %p2034_p9 = scmp.lt.u32.totalorder %s2030_s29, %s2321_s6 }
 0xaaf   :  { %p2036_p10 = pnand %p2034_p9, %p2031_p8 }
 0xab1   :  { %2039 = shalt.err (!%p2036_p10)
}
 0xab2   :  { %1252 = dma.vmem_to_hbm [thread:$0]  %s1250_s13, 32, %s2321_s6, [#allocation35]  }
 0xab3   :  { %s2040_s12 = scalar_lea.vmem %s1260_s9, 32  ;;  %p2045_p12 = scmp.lt.s32.totalorder %s1260_s9, %s1260_s9 }
 0xab4   :  { %p2041_p11 = scmp.ne.s32.totalorder %s1260_s9, %s2040_s12  ;;  %p2046_p13 = scmp.lt.s32.totalorder %s2040_s12, %s2040_s12 }
 0xab6   :  { %p2047_p0 = por %p2046_p13, %p2045_p12 }
 0xab8   :  { %p2048_p1 = pnand %p2047_p0, %p2041_p11 }
 0xaba   :  { %2051 = shalt.err (!%p2048_p1)
}
 0xabb   :  { %s2052_s11 = scalar_lea.hbm %s2326_s4, 32 }
 0xabc   :  { %p2053_p2 = scmp.ne.s32.totalorder %s2326_s4, %s2052_s11  ;;  %p2056_p3 = scmp.lt.u32.totalorder %s2052_s11, %s2326_s4 }
 0xabe   :  { %p2058_p4 = pnand %p2056_p3, %p2053_p2 }
 0xac0   :  { %2061 = shalt.err (!%p2058_p4)
}
 0xac1   :  { %1262 = dma.vmem_to_hbm [thread:$0]  %s1260_s9, 32, %s2326_s4, [#allocation35]  }
 0xac2   :  { %s2172_s17 = smov [#allocation33]  }
 0xac3   :  { %s1239_s15 = sshll.u32 %s2172_s17, 4  ;;  %s1240_s15 = int_to_ptr.vmem [resolvable:$true] %s1239_s15 }
 0xac4   :  { %s2062_s6 = scalar_lea.vmem %s1240_s15, 32  ;;  %p2067_p6 = scmp.lt.s32.totalorder %s1240_s15, %s1240_s15 }
 0xac5   :  { %p2063_p5 = scmp.ne.s32.totalorder %s1240_s15, %s2062_s6  ;;  %p2068_p7 = scmp.lt.s32.totalorder %s2062_s6, %s2062_s6 }
 0xac7   :  { %p2069_p8 = por %p2068_p7, %p2067_p6 }
 0xac9   :  { %p2070_p9 = pnand %p2069_p8, %p2063_p5 }
 0xb15   :  { %v1200_v50 = vpop.permute.xlu0 %1199 }
 0xb16   :  { %1202 = vst.msk [vmem:[#allocation33] sm:$0x3] %vm1191_vm8, %v1200_v50 }
 0xb17   :  { %2073 = shalt.err (!%p2070_p9)
}
 0xb18   :  { %s2074_s8 = scalar_lea.hbm %s2316_s30, 32 }
 0xb19   :  { %p2075_p10 = scmp.ne.s32.totalorder %s2316_s30, %s2074_s8  ;;  %p2078_p11 = scmp.lt.u32.totalorder %s2074_s8, %s2316_s30 }
 0xb1b   :  { %p2080_p12 = pnand %p2078_p11, %p2075_p10 }
 0xb1d   :  { %2083 = shalt.err (!%p2080_p12)
}
 0xb1e   :  { %1242 = dma.vmem_to_hbm [thread:$0]  %s1240_s15, 32, %s2316_s30, [#allocation32]  }
 0xb1f   :  { %2104 = dma.done.wait [#allocation4], 32  }
 0xb20   :  { %2105 = vsyncadd [#allocation4], 4294967264 }
 0xb21   :  { %2106 = dma.done.wait [#allocation32], 64  }
 0xb22   :  { %2107 = vsyncadd [#allocation32], 4294967232 }
 0xb23   :  { %2108 = dma.done.wait [#allocation35], 64  }
 0xb24   :  { %2109 = vsyncadd [#allocation35], 4294967232 }
 0xb25   :  { %2110 = dma.done.wait [#allocation38], 32  }
 0xb26   :  { %2111 = vsyncadd [#allocation38], 4294967264 }
 0xb27   :  { %1291 = vsyncpa [#allocation3], 1 }
 0xb28   :  { %1292 = vsyncpa [#allocation7], 1 }
 0xb29   :  { %1293 = vsyncpa [#allocation10], 1 }
 0xb2a   :  { %1294 = vsyncpa [#allocation13], 1 }
 0xb2b   :  { %1295 = vsyncpa [#allocation16], 1 }
 0xb2c   :  { %1296 = vsyncpa [#allocation19], 1 }
 0xb2d   :  { %1297 = vsyncpa [#allocation22], 1 }
 0xb2e   :  { %1298 = vsyncpa [#allocation25], 1 }
 0xb2f   :  { %1299 = vsyncpa [#allocation28], 1 }
 0xb30   :  { %1300 = vsyncpa [#allocation4], 1 }
 0xb31   :  { %1301 = vsyncpa [#allocation32], 1 }
 0xb32   :  { %1302 = vsyncpa [#allocation35], 1 }
 0xb33   :  { %1303 = vsyncpa [#allocation38], 1 }
 0xb34   :  { %1304 = vsyncpa [#allocation5], 1 }

</bundles_post_ra>
